<compile_context>
chip_gen: v5e
topology: v5e:2x2
jax: 0.10.0
libtpu: 0.0.40
codegen_flags: <defaults>
</compile_context>

<pallas_src>
import functools

import jax
import jax.numpy as jnp
from jax import lax
from jax.experimental import pallas as pl
from jax.experimental.pallas import tpu as pltpu


# ----------------------------------------------------------------------------------
# Shared in-kernel helpers
# ----------------------------------------------------------------------------------
def _fold_w(v, W, C):
    """(R, W*C) -> (R, C): sum the W lane groups (static, unrolled lane slices)."""
    acc = v[:, 0:C]
    for w in range(1, W):
        acc = acc + v[:, w * C:(w + 1) * C]
    return acc


def _expand_w(v, W):
    """(..., C) -> (..., W*C): repeat per-channel values across the W lane groups."""
    return jnp.concatenate([v] * W, axis=-1)


def _conv3x3_block(xf, top, bot, w9, bias, *, W, C):
    """Depthwise 3x3 'SAME' conv on a block of rows in the lane-dense layout.

    xf  : (BT, Ht, W*C) f32   image rows handled by this grid step
    top : (BT, 1,  W*C) f32   image row just above the block (zeros at the top edge)
    bot : (BT, 1,  W*C) f32   image row just below the block (zeros at the bottom edge)
    w9  : (9, W*C) f32        taps, row = kh*3 + kw, pre-tiled across W
    bias: (1, W*C) f32        conv bias, pre-tiled across W
    returns (BT, Ht, W*C) f32 conv output rows (bias included).
    """
    WC = W * C
    Ht = xf.shape[1]

    lane = lax.broadcasted_iota(jnp.int32, (1, WC), 1)[None]   # (1, 1, WC)
    at_left = lane < C            # first image column (receives wrap of the +C roll)
    at_right = lane >= WC - C     # last image column  (receives wrap of the -C roll)

    def shift_cols(v):
        # v_l[..., w*C+c] = v[..., (w-1)*C+c] (zero at w==0); v_r likewise for w+1.
        v_l = jnp.where(at_left, 0.0, pltpu.roll(v, shift=C, axis=2))
        v_r = jnp.where(at_right, 0.0, pltpu.roll(v, shift=WC - C, axis=2))
        return v_l, v_r

    x_l, x_r = shift_cols(xf)
    t_l, t_r = shift_cols(top)
    b_l, b_r = shift_cols(bot)

    # Middle kernel row (input row == output row), plus bias.
    acc = w9[3] * x_l + w9[4] * xf + w9[5] * x_r + bias
    # Top kernel row: input row h-1 feeds output row h; output row 0 is fed by `top`.
    p0 = w9[0] * x_l + w9[1] * xf + w9[2] * x_r
    p0_top = w9[0] * t_l + w9[1] * top + w9[2] * t_r
    acc = acc + jnp.concatenate([p0_top, p0[:, :Ht - 1]], axis=1)
    # Bottom kernel row: input row h+1 feeds output row h; last row is fed by `bot`.
    p2 = w9[6] * x_l + w9[7] * xf + w9[8] * x_r
    p2_bot = w9[6] * b_l + w9[7] * bot + w9[8] * b_r
    acc = acc + jnp.concatenate([p2[:, 1:], p2_bot], axis=1)
    return acc


def _se_gate(s, w1_ref, b1_ref, w2_ref, b2_ref):
    """s: (R, C) pooled conv mean -> (R, C) sigmoid gate (all f32, tiny MXU matmuls)."""
    h1 = jnp.dot(s, w1_ref[...], preferred_element_type=jnp.float32) + b1_ref[...]
    h1 = jnp.maximum(h1, 0.0)
    g = jnp.dot(h1, w2_ref[...], preferred_element_type=jnp.float32) + b2_ref[...]
    return jax.nn.sigmoid(g)


# ----------------------------------------------------------------------------------
# Kernel 1: fused single pass (whole image resident in VMEM)
# ----------------------------------------------------------------------------------
def _conv_se_single_kernel(x_ref, w9t_ref, bdwt_ref, w1_ref, b1_ref, w2_ref, b2_ref,
                           out_ref, *, H, W, C):
    WC = W * C
    xf = x_ref[...].astype(jnp.float32)                       # (BT, H, WC)
    BT = xf.shape[0]
    zrow = jnp.zeros((BT, 1, WC), jnp.float32)
    acc = _conv3x3_block(xf, zrow, zrow, w9t_ref[...], bdwt_ref[...], W=W, C=C)
    # SE pooling: big reduction over the row (sublane) axis first on full-lane tiles,
    # then fold the W lane groups of the small (BT, W*C) remainder.
    s = _fold_w(jnp.sum(acc, axis=1), W, C) * (1.0 / (H * W))  # (BT, C)
    gate = _se_gate(s, w1_ref, b1_ref, w2_ref, b2_ref)          # (BT, C)
    out_ref[...] = (acc * _expand_w(gate, W)[:, None, :]).astype(out_ref.dtype)


# ----------------------------------------------------------------------------------
# Kernel 2 (two-pass / pass 1): streaming pooled-sum reduction -> SE gate
# ----------------------------------------------------------------------------------
def _pool_gate_kernel(x_ref, wdw_ref, bdw_ref, w1_ref, b1_ref, w2_ref, b2_ref,
                      gate_ref, colsum_ref, row0_ref, *, H, W, C, Ht):
    WC = W * C
    h = pl.program_id(1)
    nh = pl.num_programs(1)
    xf = x_ref[...].astype(jnp.float32)                        # (1, Ht, WC)

    @pl.when(h == 0)
    def _():
        colsum_ref[...] = jnp.zeros_like(colsum_ref)
        row0_ref[...] = xf[:, 0, :]

    colsum_ref[...] += jnp.sum(xf, axis=1)                     # per-lane column sums

    @pl.when(h == nh - 1)
    def _():
        # Pooled sum of the zero-padded depthwise conv, computed exactly from the image
        # sum and its border row/column sums (inclusion-exclusion over the first/last
        # row and column), so this pass never materialises the conv output:
        #   sum_{h,w} y[c] = sum_{kh,kw} w[kh,kw,c] * S[kh,kw,c] + H*W*b[c]
        cs = colsum_ref[...]                                   # (1, WC) sum over rows
        r0 = row0_ref[...]                                     # (1, WC) first image row
        rl = xf[:, Ht - 1, :]                                  # (1, WC) last image row
        T = _fold_w(cs, W, C)                                  # (1, C) total image sum
        r0s = _fold_w(r0, W, C)
        rls = _fold_w(rl, W, C)
        c0 = cs[:, 0:C]                                        # first image column sum
        cl = cs[:, WC - C:WC]                                  # last image column sum
        x00 = r0[:, 0:C]
        x0l = r0[:, WC - C:WC]
        xh0 = rl[:, 0:C]
        xhl = rl[:, WC - C:WC]
        w = wdw_ref[...]                                       # (9, C)
        conv_sum = (w[0] * (T - rls - cl + xhl) + w[1] * (T - rls) + w[2] * (T - rls - c0 + xh0)
                    + w[3] * (T - cl) + w[4] * T + w[5] * (T - c0)
                    + w[6] * (T - r0s - cl + x0l) + w[7] * (T - r0s) + w[8] * (T - r0s - c0 + x00))
        s = conv_sum * (1.0 / (H * W)) + bdw_ref[...]          # mean conv output, (1, C)
        gate_ref[...] = _se_gate(s, w1_ref, b1_ref, w2_ref, b2_ref)[:, None, :]


# ----------------------------------------------------------------------------------
# Kernel 3 (two-pass / pass 2): row-tiled conv, multiply by the precomputed gate
# ----------------------------------------------------------------------------------
def _conv_gate_kernel(x_ref, halo_ref, gate_ref, w9t_ref, bdwt_ref, out_ref, *, W, C):
    xf = x_ref[...].astype(jnp.float32)                        # (1, Ht, WC)
    halo = halo_ref[...].astype(jnp.float32)                   # (1, 1, 2, WC)
    top = halo[:, 0, 0, :][:, None, :]                         # (1, 1, WC)
    bot = halo[:, 0, 1, :][:, None, :]
    acc = _conv3x3_block(xf, top, bot, w9t_ref[...], bdwt_ref[...], W=W, C=C)
    gate = gate_ref[...]                                       # (1, 1, C) f32
    out_ref[...] = (acc * _expand_w(gate, W)).astype(out_ref.dtype)


# ----------------------------------------------------------------------------------
# Block-size heuristics
# ----------------------------------------------------------------------------------
def _pick_batch_block(B, per_image_io, per_image_need, budget, target_io=2 * 1024 * 1024):
    """Largest divisor of B whose per-step footprint fits `budget`, whose I/O block is
    near the 1-2 MiB pipelining sweet spot, and that leaves >= 2 grid steps for the two
    v7x TensorCores (when B allows)."""
    best = 1
    for d in range(1, B + 1):
        if B % d:
            continue
        if d > 1 and d * per_image_need > budget:
            continue
        if d > 1 and d * per_image_io > target_io:
            continue
        if B >= 2 and (B // d) < 2:
            continue
        best = d
    return best


def _pick_height_block(H, per_row_io, per_row_need, budget, target_io=2 * 1024 * 1024):
    """Largest row tile that is a multiple of 8 (or H itself), fits the VMEM budget and
    keeps the per-step x block near the 1-2 MiB sweet spot."""
    cands = sorted({d for d in range(8, H + 1, 8) if H % d == 0} | {H})
    fit_budget = [d for d in cands if d * per_row_need <= budget] or [min(cands)]
    fit_target = [d for d in fit_budget if d * per_row_io <= target_io]
    return max(fit_target) if fit_target else min(fit_budget)


# ----------------------------------------------------------------------------------
# Wrapper
# ----------------------------------------------------------------------------------
def dwconv_se_forward(x, H, W, params, *, io_dtype=None, mode="auto", ht=None):
    """Forward pass of DWConv (depthwise 3x3 conv + SE gate).

    x: (B, N, C) with N == H*W.  Returns (B, N, C) in `io_dtype` (defaults to x.dtype).
    mode: "auto" | "single" | "two_pass".  `ht` optionally forces the H tile of the
    two-pass path (must divide H and be a multiple of 8, or equal H).
    """
    B, N, C = x.shape
    assert N == H * W
    wdw9, bdw, w1, b1, w2, b2 = params
    Cr = w1.shape[1]
    WC = W * C

    io_dt = jnp.dtype(io_dtype) if io_dtype is not None else x.dtype
    xv = x.reshape(B, H, WC).astype(io_dt)        # free relabel (cast only if requested)

    f32 = jnp.float32
    wdw9f = wdw9.astype(f32)
    bdwf = bdw.astype(f32)
    w1f, b1f, w2f, b2f = (w1.astype(f32), b1.astype(f32), w2.astype(f32), b2.astype(f32))
    # Depthwise taps / bias pre-tiled across W -> plain per-lane vectors in the
    # lane-dense layout (their index maps are constant, so they are fetched once).
    w9t = jnp.tile(wdw9f, (1, W))                 # (9, W*C)
    bdwt = jnp.tile(bdwf, (1, W))                 # (1, W*C)

    # ---- VMEM budget: from the chip, with ~25% headroom (review: never clamp at the
    # full 64 MiB of a v7x TensorCore). ------------------------------------------------
    try:
        phys_vmem = int(pltpu.get_tpu_info().vmem_capacity_bytes)
    except Exception:
        phys_vmem = 64 * 1024 * 1024              # conservative: v7x per-core VMEM
    budget = (3 * phys_vmem) // 4
    vmem_limit = int(budget)

    io_item = jnp.dtype(io_dt).itemsize
    row_io = WC * io_item
    row_f32 = WC * 4
    img_io = H * row_io
    img_f32 = H * row_f32
    # double-buffered in+out blocks + ~8 live f32 temporaries (conservative estimate)
    per_img_need = 4 * img_io + 8 * img_f32
    params_vmem = 2 * (10 * WC + C * Cr + Cr + Cr * C + 2 * C) * 4

    single_ok = per_img_need + params_vmem <= int(0.8 * budget)
    if mode == "single" or (mode == "auto" and single_ok):
        bt = _pick_batch_block(B, img_io, per_img_need,
                               budget=int(0.8 * budget) - params_vmem)
        y = pl.pallas_call(
            functools.partial(_conv_se_single_kernel, H=H, W=W, C=C),
            out_shape=jax.ShapeDtypeStruct((B, H, WC), io_dt),
            grid_spec=pltpu.PrefetchScalarGridSpec(
                num_scalar_prefetch=0,
                grid=(B // bt,),
                in_specs=[
                    pl.BlockSpec((bt, H, WC), lambda b: (b, 0, 0)),
                    pl.BlockSpec((9, WC), lambda b: (0, 0)),
                    pl.BlockSpec((1, WC), lambda b: (0, 0)),
                    pl.BlockSpec((C, Cr), lambda b: (0, 0)),
                    pl.BlockSpec((1, Cr), lambda b: (0, 0)),
                    pl.BlockSpec((Cr, C), lambda b: (0, 0)),
                    pl.BlockSpec((1, C), lambda b: (0, 0)),
                ],
                out_specs=pl.BlockSpec((bt, H, WC), lambda b: (b, 0, 0)),
            ),
            compiler_params=pltpu.CompilerParams(
                dimension_semantics=("parallel",),
                vmem_limit_bytes=vmem_limit),
        )(xv, w9t, bdwt, w1f, b1f, w2f, b2f)
        return y.reshape(B, N, C)

    # ---- row-tiled two-pass path -------------------------------------------------------
    if ht is None:
        per_row_need = 4 * row_io + 8 * row_f32
        ht = _pick_height_block(H, row_io, per_row_need, budget=int(0.8 * budget))
    assert H % ht == 0 and (ht % 8 == 0 or ht == H), \
        "ht must divide H and be a multiple of 8 (or equal H)"
    nH = H // ht

    # One-row halos above/below every row tile (zeros at the image edges), so pass 2
    # never needs a padded copy of x or an out-of-block read.
    zero_row = jnp.zeros((B, 1, WC), io_dt)
    if nH > 1:
        top = jnp.concatenate([zero_row, xv[:, ht - 1::ht, :][:, :nH - 1, :]], axis=1)
        bot = jnp.concatenate([xv[:, ht::ht, :], zero_row], axis=1)
    else:
        top, bot = zero_row, zero_row
    halos = jnp.stack([top, bot], axis=2)                      # (B, nH, 2, WC)

    # Pass 1: streaming reduction over row tiles -> SE gate (B, 1, C), pooled sums
    # carried in VMEM scratch across the "arbitrary" H grid axis.
    gate = pl.pallas_call(
        functools.partial(_pool_gate_kernel, H=H, W=W, C=C, Ht=ht),
        out_shape=jax.ShapeDtypeStruct((B, 1, C), jnp.float32),
        grid_spec=pltpu.PrefetchScalarGridSpec(
            num_scalar_prefetch=0,
            grid=(B, nH),
            in_specs=[
                pl.BlockSpec((1, ht, WC), lambda b, h: (b, h, 0)),
                pl.BlockSpec((9, C), lambda b, h: (0, 0)),
                pl.BlockSpec((1, C), lambda b, h: (0, 0)),
                pl.BlockSpec((C, Cr), lambda b, h: (0, 0)),
                pl.BlockSpec((1, Cr), lambda b, h: (0, 0)),
                pl.BlockSpec((Cr, C), lambda b, h: (0, 0)),
                pl.BlockSpec((1, C), lambda b, h: (0, 0)),
            ],
            out_specs=pl.BlockSpec((1, 1, C), lambda b, h: (b, 0, 0)),
            scratch_shapes=[pltpu.VMEM((1, WC), jnp.float32),
                            pltpu.VMEM((1, WC), jnp.float32)],
        ),
        compiler_params=pltpu.CompilerParams(
            dimension_semantics=("parallel", "arbitrary"),
            vmem_limit_bytes=vmem_limit),
    )(xv, wdw9f, bdwf, w1f, b1f, w2f, b2f)

    # Pass 2: recompute the conv per row tile (cheaper than writing y to HBM and
    # re-reading it) and apply the gate.
    y = pl.pallas_call(
        functools.partial(_conv_gate_kernel, W=W, C=C),
        out_shape=jax.ShapeDtypeStruct((B, H, WC), io_dt),
        grid_spec=pltpu.PrefetchScalarGridSpec(
            num_scalar_prefetch=0,
            grid=(B, nH),
            in_specs=[
                pl.BlockSpec((1, ht, WC), lambda b, h: (b, h, 0)),
                pl.BlockSpec((1, 1, 2, WC), lambda b, h: (b, h, 0, 0)),
                pl.BlockSpec((1, 1, C), lambda b, h: (b, 0, 0)),
                pl.BlockSpec((9, WC), lambda b, h: (0, 0)),
                pl.BlockSpec((1, WC), lambda b, h: (0, 0)),
            ],
            out_specs=pl.BlockSpec((1, ht, WC), lambda b, h: (b, h, 0)),
        ),
        compiler_params=pltpu.CompilerParams(
            dimension_semantics=("parallel", "parallel"),
            vmem_limit_bytes=vmem_limit),
    )(xv, halos, gate, w9t, bdwt)
    return y.reshape(B, N, C)


# ----------------------------------------------------------------------------------
# Pure-JAX reference (matches the PyTorch module semantics)
# ----------------------------------------------------------------------------------
def reference_forward(x, H, W, params):
    B, N, C = x.shape
    wdw9, bdw, w1, b1, w2, b2 = params
    x_nhwc = x.reshape(B, H, W, C)
    k_hwio = wdw9.reshape(3, 3, C)[:, :, None, :]              # (3, 3, 1, C)
    y = lax.conv_general_dilated(
        x_nhwc, k_hwio, window_strides=(1, 1), padding="SAME",
        dimension_numbers=("NHWC", "HWIO", "NHWC"), feature_group_count=C,
    ) + bdw.reshape(1, 1, 1, C)
    s = jnp.mean(y, axis=(1, 2))                               # (B, C)
    h1 = jnp.maximum(s @ w1 + b1, 0.0)
    gate = jax.nn.sigmoid(h1 @ w2 + b2)
    out = y * gate[:, None, None, :]
    return out.reshape(B, N, C)


def make_params(key, C, reduction=4):
    Cr = C // reduction
    k = jax.random.split(key, 6)
    # depthwise conv weight: PyTorch (C, 1, 3, 3) -> stored as (9, C), row = kh*3 + kw
    w_c33 = jax.random.normal(k[0], (C, 3, 3), jnp.float32) * 0.2
    wdw9 = jnp.transpose(w_c33, (1, 2, 0)).reshape(9, C)
    bdw = jax.random.normal(k[1], (1, C), jnp.float32) * 0.05
    # fc1: Linear(C -> Cr) pre-transposed so out = x @ w1 + b1
    w1 = jax.random.normal(k[2], (C, Cr), jnp.float32) * (1.0 / jnp.sqrt(C))
    b1 = jax.random.normal(k[3], (1, Cr), jnp.float32) * 0.05
    # fc2: Linear(Cr -> C)
    w2 = jax.random.normal(k[4], (Cr, C), jnp.float32) * (1.0 / jnp.sqrt(Cr))
    b2 = jax.random.normal(k[5], (1, C), jnp.float32) * 0.05
    return (wdw9, bdw, w1, b1, w2, b2)


if __name__ == "__main__":
    B, C, H, W = 2, 32, 16, 16          # small stand-in for dim=768; reduction=4
    N = H * W

    key = jax.random.PRNGKey(0)
    kx, kp = jax.random.split(key)
    x = jax.random.normal(kx, (B, N, C), jnp.float32)
    params = make_params(kp, C, reduction=4)

    ref = jax.block_until_ready(reference_forward(x, H, W, params))

    # Path 1: auto (fits VMEM at this size -> fused single-pass conv+SE kernel).
    out = jax.block_until_ready(dwconv_se_forward(x, H, W, params))
    assert out.shape == (B, N, C)
    err = float(jnp.max(jnp.abs(out - ref)))
    assert err < 1e-4, f"single-pass max abs err {err}"

    # Path 2: forced row-tiled two-pass path (the production-size path), 2 row tiles.
    out2 = jax.block_until_ready(dwconv_se_forward(x, H, W, params, mode="two_pass", ht=8))
    err2 = float(jnp.max(jnp.abs(out2 - ref)))
    assert err2 < 1e-4, f"two-pass max abs err {err2}"

    # Path 3: bf16 HBM I/O (in-kernel compute stays f32).
    out3 = jax.block_until_ready(
        dwconv_se_forward(x, H, W, params, mode="two_pass", ht=8, io_dtype=jnp.bfloat16))
    err3 = float(jnp.max(jnp.abs(out3.astype(jnp.float32) - ref)))
    assert err3 < 0.1, f"bf16 I/O max abs err {err3}"

    print("KERNEL_OK")
</pallas_src>

<mosaic_0001>
module attributes {stable_mosaic.version = 11 : i64} {
  func.func @_conv_se_single_kernel(%arg0: i32, %arg1: memref<1x16x512xf32, #tpu.memory_space<vmem>>, %arg2: memref<9x512xf32, #tpu.memory_space<vmem>>, %arg3: memref<1x512xf32, #tpu.memory_space<vmem>>, %arg4: memref<32x8xf32, #tpu.memory_space<vmem>>, %arg5: memref<1x8xf32, #tpu.memory_space<vmem>>, %arg6: memref<8x32xf32, #tpu.memory_space<vmem>>, %arg7: memref<1x32xf32, #tpu.memory_space<vmem>>, %arg8: memref<1x16x512xf32, #tpu.memory_space<vmem>>) attributes {dimension_semantics = [#tpu.dimension_semantics<parallel>], iteration_bounds = array<i64: 2>, scalar_prefetch = 0 : i64, scratch_operands = 0 : i64, tpu.core_type = #tpu.core_type<tc>, window_params = [{transform_indices = @transform_0, window_bounds = array<i64: 1, 16, 512>}, {pipeline_mode = #tpu.pipeline_mode<synchronous>, transform_indices = @transform_1, window_bounds = array<i64: 9, 512>}, {pipeline_mode = #tpu.pipeline_mode<synchronous>, transform_indices = @transform_2, window_bounds = array<i64: 1, 512>}, {pipeline_mode = #tpu.pipeline_mode<synchronous>, transform_indices = @transform_3, window_bounds = array<i64: 32, 8>}, {pipeline_mode = #tpu.pipeline_mode<synchronous>, transform_indices = @transform_4, window_bounds = array<i64: 1, 8>}, {pipeline_mode = #tpu.pipeline_mode<synchronous>, transform_indices = @transform_5, window_bounds = array<i64: 8, 32>}, {pipeline_mode = #tpu.pipeline_mode<synchronous>, transform_indices = @transform_6, window_bounds = array<i64: 1, 32>}, {transform_indices = @transform_7, window_bounds = array<i64: 1, 16, 512>}]} {
    %c0 = arith.constant 0 : index
    %c0_0 = arith.constant 0 : index
    %c0_1 = arith.constant 0 : index
    %0 = vector.load %arg1[%c0, %c0_0, %c0_1] : memref<1x16x512xf32, #tpu.memory_space<vmem>>, vector<1x16x512xf32>
    %cst = arith.constant 0.000000e+00 : f32
    %1 = vector.broadcast %cst : f32 to vector<1x1x512xf32>
    %c0_2 = arith.constant 0 : index
    %c0_3 = arith.constant 0 : index
    %2 = vector.load %arg2[%c0_2, %c0_3] : memref<9x512xf32, #tpu.memory_space<vmem>>, vector<9x512xf32>
    %c0_4 = arith.constant 0 : index
    %c0_5 = arith.constant 0 : index
    %3 = vector.load %arg3[%c0_4, %c0_5] : memref<1x512xf32, #tpu.memory_space<vmem>>, vector<1x512xf32>
    %4 = tpu.iota {dimensions = array<i32: 1>} : vector<1x512xi32>
    %5 = vector.shape_cast %4 : vector<1x512xi32> to vector<1x1x512xi32>
    %c32_i32 = arith.constant 32 : i32
    %6 = vector.broadcast %c32_i32 : i32 to vector<1x1x512xi32>
    %7 = arith.cmpi slt, %5, %6 : vector<1x1x512xi32>
    %c480_i32 = arith.constant 480 : i32
    %8 = vector.broadcast %c480_i32 : i32 to vector<1x1x512xi32>
    %9 = arith.cmpi sge, %5, %8 : vector<1x1x512xi32>
    %c32_i32_6 = arith.constant 32 : i32
    %10 = tpu.dynamic_rotate %0 by %c32_i32_6 dim 2 : vector<1x16x512xf32>, i32 -> vector<1x16x512xf32>
    %cst_7 = arith.constant 0.000000e+00 : f32
    %11 = vector.shape_cast %7 : vector<1x1x512xi1> to vector<1x1x512xi1>
    %12 = vector.broadcast %11 : vector<1x1x512xi1> to vector<1x16x512xi1>
    %13 = vector.broadcast %cst_7 : f32 to vector<1x16x512xf32>
    %14 = arith.select %12, %13, %10 : vector<1x16x512xi1>, vector<1x16x512xf32>
    %c480_i32_8 = arith.constant 480 : i32
    %15 = tpu.dynamic_rotate %0 by %c480_i32_8 dim 2 : vector<1x16x512xf32>, i32 -> vector<1x16x512xf32>
    %cst_9 = arith.constant 0.000000e+00 : f32
    %16 = vector.shape_cast %9 : vector<1x1x512xi1> to vector<1x1x512xi1>
    %17 = vector.broadcast %16 : vector<1x1x512xi1> to vector<1x16x512xi1>
    %18 = vector.broadcast %cst_9 : f32 to vector<1x16x512xf32>
    %19 = arith.select %17, %18, %15 : vector<1x16x512xi1>, vector<1x16x512xf32>
    %c32_i32_10 = arith.constant 32 : i32
    %20 = tpu.dynamic_rotate %1 by %c32_i32_10 dim 2 : vector<1x1x512xf32>, i32 -> vector<1x1x512xf32>
    %cst_11 = arith.constant 0.000000e+00 : f32
    %21 = vector.broadcast %cst_11 : f32 to vector<1x1x512xf32>
    %22 = arith.select %7, %21, %20 : vector<1x1x512xi1>, vector<1x1x512xf32>
    %c480_i32_12 = arith.constant 480 : i32
    %23 = tpu.dynamic_rotate %1 by %c480_i32_12 dim 2 : vector<1x1x512xf32>, i32 -> vector<1x1x512xf32>
    %cst_13 = arith.constant 0.000000e+00 : f32
    %24 = vector.broadcast %cst_13 : f32 to vector<1x1x512xf32>
    %25 = arith.select %9, %24, %23 : vector<1x1x512xi1>, vector<1x1x512xf32>
    %c32_i32_14 = arith.constant 32 : i32
    %26 = tpu.dynamic_rotate %1 by %c32_i32_14 dim 2 : vector<1x1x512xf32>, i32 -> vector<1x1x512xf32>
    %cst_15 = arith.constant 0.000000e+00 : f32
    %27 = vector.broadcast %cst_15 : f32 to vector<1x1x512xf32>
    %28 = arith.select %7, %27, %26 : vector<1x1x512xi1>, vector<1x1x512xf32>
    %c480_i32_16 = arith.constant 480 : i32
    %29 = tpu.dynamic_rotate %1 by %c480_i32_16 dim 2 : vector<1x1x512xf32>, i32 -> vector<1x1x512xf32>
    %cst_17 = arith.constant 0.000000e+00 : f32
    %30 = vector.broadcast %cst_17 : f32 to vector<1x1x512xf32>
    %31 = arith.select %9, %30, %29 : vector<1x1x512xi1>, vector<1x1x512xf32>
    %32 = vector.extract_strided_slice %2 {offsets = [3, 0], sizes = [1, 512], strides = [1, 1]} : vector<9x512xf32> to vector<1x512xf32>
    %33 = vector.shape_cast %32 : vector<1x512xf32> to vector<512xf32>
    %34 = vector.shape_cast %33 : vector<512xf32> to vector<1x1x512xf32>
    %35 = vector.broadcast %34 : vector<1x1x512xf32> to vector<1x16x512xf32>
    %36 = arith.mulf %35, %14 : vector<1x16x512xf32>
    %37 = vector.extract_strided_slice %2 {offsets = [4, 0], sizes = [1, 512], strides = [1, 1]} : vector<9x512xf32> to vector<1x512xf32>
    %38 = vector.shape_cast %37 : vector<1x512xf32> to vector<512xf32>
    %39 = vector.shape_cast %38 : vector<512xf32> to vector<1x1x512xf32>
    %40 = vector.broadcast %39 : vector<1x1x512xf32> to vector<1x16x512xf32>
    %41 = arith.mulf %40, %0 : vector<1x16x512xf32>
    %42 = arith.addf %36, %41 : vector<1x16x512xf32>
    %43 = vector.extract_strided_slice %2 {offsets = [5, 0], sizes = [1, 512], strides = [1, 1]} : vector<9x512xf32> to vector<1x512xf32>
    %44 = vector.shape_cast %43 : vector<1x512xf32> to vector<512xf32>
    %45 = vector.shape_cast %44 : vector<512xf32> to vector<1x1x512xf32>
    %46 = vector.broadcast %45 : vector<1x1x512xf32> to vector<1x16x512xf32>
    %47 = arith.mulf %46, %19 : vector<1x16x512xf32>
    %48 = arith.addf %42, %47 : vector<1x16x512xf32>
    %49 = vector.shape_cast %3 : vector<1x512xf32> to vector<1x1x512xf32>
    %50 = vector.broadcast %49 : vector<1x1x512xf32> to vector<1x16x512xf32>
    %51 = arith.addf %48, %50 : vector<1x16x512xf32>
    %52 = vector.extract_strided_slice %2 {offsets = [0, 0], sizes = [1, 512], strides = [1, 1]} : vector<9x512xf32> to vector<1x512xf32>
    %53 = vector.shape_cast %52 : vector<1x512xf32> to vector<512xf32>
    %54 = vector.shape_cast %53 : vector<512xf32> to vector<1x1x512xf32>
    %55 = vector.broadcast %54 : vector<1x1x512xf32> to vector<1x16x512xf32>
    %56 = arith.mulf %55, %14 : vector<1x16x512xf32>
    %57 = vector.extract_strided_slice %2 {offsets = [1, 0], sizes = [1, 512], strides = [1, 1]} : vector<9x512xf32> to vector<1x512xf32>
    %58 = vector.shape_cast %57 : vector<1x512xf32> to vector<512xf32>
    %59 = vector.shape_cast %58 : vector<512xf32> to vector<1x1x512xf32>
    %60 = vector.broadcast %59 : vector<1x1x512xf32> to vector<1x16x512xf32>
    %61 = arith.mulf %60, %0 : vector<1x16x512xf32>
    %62 = arith.addf %56, %61 : vector<1x16x512xf32>
    %63 = vector.extract_strided_slice %2 {offsets = [2, 0], sizes = [1, 512], strides = [1, 1]} : vector<9x512xf32> to vector<1x512xf32>
    %64 = vector.shape_cast %63 : vector<1x512xf32> to vector<512xf32>
    %65 = vector.shape_cast %64 : vector<512xf32> to vector<1x1x512xf32>
    %66 = vector.broadcast %65 : vector<1x1x512xf32> to vector<1x16x512xf32>
    %67 = arith.mulf %66, %19 : vector<1x16x512xf32>
    %68 = arith.addf %62, %67 : vector<1x16x512xf32>
    %69 = vector.extract_strided_slice %2 {offsets = [0, 0], sizes = [1, 512], strides = [1, 1]} : vector<9x512xf32> to vector<1x512xf32>
    %70 = vector.shape_cast %69 : vector<1x512xf32> to vector<512xf32>
    %71 = vector.shape_cast %70 : vector<512xf32> to vector<1x1x512xf32>
    %72 = arith.mulf %71, %22 : vector<1x1x512xf32>
    %73 = vector.extract_strided_slice %2 {offsets = [1, 0], sizes = [1, 512], strides = [1, 1]} : vector<9x512xf32> to vector<1x512xf32>
    %74 = vector.shape_cast %73 : vector<1x512xf32> to vector<512xf32>
    %75 = vector.shape_cast %74 : vector<512xf32> to vector<1x1x512xf32>
    %76 = arith.mulf %75, %1 : vector<1x1x512xf32>
    %77 = arith.addf %72, %76 : vector<1x1x512xf32>
    %78 = vector.extract_strided_slice %2 {offsets = [2, 0], sizes = [1, 512], strides = [1, 1]} : vector<9x512xf32> to vector<1x512xf32>
    %79 = vector.shape_cast %78 : vector<1x512xf32> to vector<512xf32>
    %80 = vector.shape_cast %79 : vector<512xf32> to vector<1x1x512xf32>
    %81 = arith.mulf %80, %25 : vector<1x1x512xf32>
    %82 = arith.addf %77, %81 : vector<1x1x512xf32>
    %83 = vector.extract_strided_slice %68 {offsets = [0, 0, 0], sizes = [1, 15, 512], strides = [1, 1, 1]} : vector<1x16x512xf32> to vector<1x15x512xf32>
    %84 = tpu.concatenate %82, %83 in 1 : vector<1x1x512xf32>, vector<1x15x512xf32> -> vector<1x16x512xf32>
    %85 = arith.addf %51, %84 : vector<1x16x512xf32>
    %86 = vector.extract_strided_slice %2 {offsets = [6, 0], sizes = [1, 512], strides = [1, 1]} : vector<9x512xf32> to vector<1x512xf32>
    %87 = vector.shape_cast %86 : vector<1x512xf32> to vector<512xf32>
    %88 = vector.shape_cast %87 : vector<512xf32> to vector<1x1x512xf32>
    %89 = vector.broadcast %88 : vector<1x1x512xf32> to vector<1x16x512xf32>
    %90 = arith.mulf %89, %14 : vector<1x16x512xf32>
    %91 = vector.extract_strided_slice %2 {offsets = [7, 0], sizes = [1, 512], strides = [1, 1]} : vector<9x512xf32> to vector<1x512xf32>
    %92 = vector.shape_cast %91 : vector<1x512xf32> to vector<512xf32>
    %93 = vector.shape_cast %92 : vector<512xf32> to vector<1x1x512xf32>
    %94 = vector.broadcast %93 : vector<1x1x512xf32> to vector<1x16x512xf32>
    %95 = arith.mulf %94, %0 : vector<1x16x512xf32>
    %96 = arith.addf %90, %95 : vector<1x16x512xf32>
    %97 = vector.extract_strided_slice %2 {offsets = [8, 0], sizes = [1, 512], strides = [1, 1]} : vector<9x512xf32> to vector<1x512xf32>
    %98 = vector.shape_cast %97 : vector<1x512xf32> to vector<512xf32>
    %99 = vector.shape_cast %98 : vector<512xf32> to vector<1x1x512xf32>
    %100 = vector.broadcast %99 : vector<1x1x512xf32> to vector<1x16x512xf32>
    %101 = arith.mulf %100, %19 : vector<1x16x512xf32>
    %102 = arith.addf %96, %101 : vector<1x16x512xf32>
    %103 = vector.extract_strided_slice %2 {offsets = [6, 0], sizes = [1, 512], strides = [1, 1]} : vector<9x512xf32> to vector<1x512xf32>
    %104 = vector.shape_cast %103 : vector<1x512xf32> to vector<512xf32>
    %105 = vector.shape_cast %104 : vector<512xf32> to vector<1x1x512xf32>
    %106 = arith.mulf %105, %28 : vector<1x1x512xf32>
    %107 = vector.extract_strided_slice %2 {offsets = [7, 0], sizes = [1, 512], strides = [1, 1]} : vector<9x512xf32> to vector<1x512xf32>
    %108 = vector.shape_cast %107 : vector<1x512xf32> to vector<512xf32>
    %109 = vector.shape_cast %108 : vector<512xf32> to vector<1x1x512xf32>
    %110 = arith.mulf %109, %1 : vector<1x1x512xf32>
    %111 = arith.addf %106, %110 : vector<1x1x512xf32>
    %112 = vector.extract_strided_slice %2 {offsets = [8, 0], sizes = [1, 512], strides = [1, 1]} : vector<9x512xf32> to vector<1x512xf32>
    %113 = vector.shape_cast %112 : vector<1x512xf32> to vector<512xf32>
    %114 = vector.shape_cast %113 : vector<512xf32> to vector<1x1x512xf32>
    %115 = arith.mulf %114, %31 : vector<1x1x512xf32>
    %116 = arith.addf %111, %115 : vector<1x1x512xf32>
    %117 = vector.extract_strided_slice %102 {offsets = [0, 1, 0], sizes = [1, 15, 512], strides = [1, 1, 1]} : vector<1x16x512xf32> to vector<1x15x512xf32>
    %118 = tpu.concatenate %117, %116 in 1 : vector<1x15x512xf32>, vector<1x1x512xf32> -> vector<1x16x512xf32>
    %119 = arith.addf %85, %118 : vector<1x16x512xf32>
    %cst_18 = arith.constant dense<0.000000e+00> : vector<1x512xf32>
    %120 = vector.multi_reduction <add>, %119, %cst_18 [1] : vector<1x16x512xf32> to vector<1x512xf32>
    %121 = vector.extract_strided_slice %120 {offsets = [0, 0], sizes = [1, 32], strides = [1, 1]} : vector<1x512xf32> to vector<1x32xf32>
    %122 = vector.extract_strided_slice %120 {offsets = [0, 32], sizes = [1, 32], strides = [1, 1]} : vector<1x512xf32> to vector<1x32xf32>
    %123 = arith.addf %121, %122 : vector<1x32xf32>
    %124 = vector.extract_strided_slice %120 {offsets = [0, 64], sizes = [1, 32], strides = [1, 1]} : vector<1x512xf32> to vector<1x32xf32>
    %125 = arith.addf %123, %124 : vector<1x32xf32>
    %126 = vector.extract_strided_slice %120 {offsets = [0, 96], sizes = [1, 32], strides = [1, 1]} : vector<1x512xf32> to vector<1x32xf32>
    %127 = arith.addf %125, %126 : vector<1x32xf32>
    %128 = vector.extract_strided_slice %120 {offsets = [0, 128], sizes = [1, 32], strides = [1, 1]} : vector<1x512xf32> to vector<1x32xf32>
    %129 = arith.addf %127, %128 : vector<1x32xf32>
    %130 = vector.extract_strided_slice %120 {offsets = [0, 160], sizes = [1, 32], strides = [1, 1]} : vector<1x512xf32> to vector<1x32xf32>
    %131 = arith.addf %129, %130 : vector<1x32xf32>
    %132 = vector.extract_strided_slice %120 {offsets = [0, 192], sizes = [1, 32], strides = [1, 1]} : vector<1x512xf32> to vector<1x32xf32>
    %133 = arith.addf %131, %132 : vector<1x32xf32>
    %134 = vector.extract_strided_slice %120 {offsets = [0, 224], sizes = [1, 32], strides = [1, 1]} : vector<1x512xf32> to vector<1x32xf32>
    %135 = arith.addf %133, %134 : vector<1x32xf32>
    %136 = vector.extract_strided_slice %120 {offsets = [0, 256], sizes = [1, 32], strides = [1, 1]} : vector<1x512xf32> to vector<1x32xf32>
    %137 = arith.addf %135, %136 : vector<1x32xf32>
    %138 = vector.extract_strided_slice %120 {offsets = [0, 288], sizes = [1, 32], strides = [1, 1]} : vector<1x512xf32> to vector<1x32xf32>
    %139 = arith.addf %137, %138 : vector<1x32xf32>
    %140 = vector.extract_strided_slice %120 {offsets = [0, 320], sizes = [1, 32], strides = [1, 1]} : vector<1x512xf32> to vector<1x32xf32>
    %141 = arith.addf %139, %140 : vector<1x32xf32>
    %142 = vector.extract_strided_slice %120 {offsets = [0, 352], sizes = [1, 32], strides = [1, 1]} : vector<1x512xf32> to vector<1x32xf32>
    %143 = arith.addf %141, %142 : vector<1x32xf32>
    %144 = vector.extract_strided_slice %120 {offsets = [0, 384], sizes = [1, 32], strides = [1, 1]} : vector<1x512xf32> to vector<1x32xf32>
    %145 = arith.addf %143, %144 : vector<1x32xf32>
    %146 = vector.extract_strided_slice %120 {offsets = [0, 416], sizes = [1, 32], strides = [1, 1]} : vector<1x512xf32> to vector<1x32xf32>
    %147 = arith.addf %145, %146 : vector<1x32xf32>
    %148 = vector.extract_strided_slice %120 {offsets = [0, 448], sizes = [1, 32], strides = [1, 1]} : vector<1x512xf32> to vector<1x32xf32>
    %149 = arith.addf %147, %148 : vector<1x32xf32>
    %150 = vector.extract_strided_slice %120 {offsets = [0, 480], sizes = [1, 32], strides = [1, 1]} : vector<1x512xf32> to vector<1x32xf32>
    %151 = arith.addf %149, %150 : vector<1x32xf32>
    %cst_19 = arith.constant 3.906250e-03 : f32
    %152 = vector.broadcast %cst_19 : f32 to vector<1x32xf32>
    %153 = arith.mulf %151, %152 : vector<1x32xf32>
    %c0_20 = arith.constant 0 : index
    %c0_21 = arith.constant 0 : index
    %154 = vector.load %arg4[%c0_20, %c0_21] : memref<32x8xf32, #tpu.memory_space<vmem>>, vector<32x8xf32>
    %cst_22 = arith.constant dense<0.000000e+00> : vector<1x8xf32>
    %155 = tpu.matmul %153, %154, %cst_22 {dimension_numbers = #tpu.dot_dimension_numbers<[1], [0], [0], [1], [0, 0, 1, 1], [], []>} : vector<1x32xf32>, vector<32x8xf32>, vector<1x8xf32> -> vector<1x8xf32>
    %c0_23 = arith.constant 0 : index
    %c0_24 = arith.constant 0 : index
    %156 = vector.load %arg5[%c0_23, %c0_24] : memref<1x8xf32, #tpu.memory_space<vmem>>, vector<1x8xf32>
    %157 = arith.addf %155, %156 : vector<1x8xf32>
    %cst_25 = arith.constant 0.000000e+00 : f32
    %158 = vector.broadcast %cst_25 : f32 to vector<1x8xf32>
    %159 = arith.maximumf %157, %158 : vector<1x8xf32>
    %c0_26 = arith.constant 0 : index
    %c0_27 = arith.constant 0 : index
    %160 = vector.load %arg6[%c0_26, %c0_27] : memref<8x32xf32, #tpu.memory_space<vmem>>, vector<8x32xf32>
    %cst_28 = arith.constant dense<0.000000e+00> : vector<1x32xf32>
    %161 = tpu.matmul %159, %160, %cst_28 {dimension_numbers = #tpu.dot_dimension_numbers<[1], [0], [0], [1], [0, 0, 1, 1], [], []>} : vector<1x8xf32>, vector<8x32xf32>, vector<1x32xf32> -> vector<1x32xf32>
    %c0_29 = arith.constant 0 : index
    %c0_30 = arith.constant 0 : index
    %162 = vector.load %arg7[%c0_29, %c0_30] : memref<1x32xf32, #tpu.memory_space<vmem>>, vector<1x32xf32>
    %163 = arith.addf %161, %162 : vector<1x32xf32>
    %164 = arith.negf %163 : vector<1x32xf32>
    %165 = math.exp %164 : vector<1x32xf32>
    %cst_31 = arith.constant 1.000000e+00 : f32
    %166 = vector.broadcast %cst_31 : f32 to vector<1x32xf32>
    %167 = arith.addf %166, %165 : vector<1x32xf32>
    %168 = arith.divf %166, %167 : vector<1x32xf32>
    %169 = tpu.concatenate %168, %168, %168, %168, %168, %168, %168, %168, %168, %168, %168, %168, %168, %168, %168, %168 in 1 : vector<1x32xf32>, vector<1x32xf32>, vector<1x32xf32>, vector<1x32xf32>, vector<1x32xf32>, vector<1x32xf32>, vector<1x32xf32>, vector<1x32xf32>, vector<1x32xf32>, vector<1x32xf32>, vector<1x32xf32>, vector<1x32xf32>, vector<1x32xf32>, vector<1x32xf32>, vector<1x32xf32>, vector<1x32xf32> -> vector<1x512xf32>
    %170 = vector.shape_cast %169 : vector<1x512xf32> to vector<1x1x512xf32>
    %171 = vector.broadcast %170 : vector<1x1x512xf32> to vector<1x16x512xf32>
    %172 = arith.mulf %119, %171 : vector<1x16x512xf32>
    %c0_32 = arith.constant 0 : index
    %c0_33 = arith.constant 0 : index
    %c0_34 = arith.constant 0 : index
    %173 = vector.load %arg8[%c0_32, %c0_33, %c0_34] : memref<1x16x512xf32, #tpu.memory_space<vmem>>, vector<1x16x512xf32>
    tpu.vector_store %arg8[%c0_32, %c0_33, %c0_34], %172 {strides = array<i32>} : memref<1x16x512xf32, #tpu.memory_space<vmem>>, vector<1x16x512xf32>,
    return
  }
  func.func @transform_0(%arg0: i32) -> (i32, i32, i32) {
    %c0_i32 = arith.constant 0 : i32
    %c0_i32_0 = arith.constant 0 : i32
    %c0_i32_1 = arith.constant 0 : i32
    return %arg0, %c0_i32, %c0_i32_0 : i32, i32, i32
  }
  func.func @transform_1(%arg0: i32) -> (i32, i32) {
    %c0_i32 = arith.constant 0 : i32
    %c0_i32_0 = arith.constant 0 : i32
    %c0_i32_1 = arith.constant 0 : i32
    return %c0_i32, %c0_i32_0 : i32, i32
  }
  func.func @transform_2(%arg0: i32) -> (i32, i32) {
    %c0_i32 = arith.constant 0 : i32
    %c0_i32_0 = arith.constant 0 : i32
    %c0_i32_1 = arith.constant 0 : i32
    return %c0_i32, %c0_i32_0 : i32, i32
  }
  func.func @transform_3(%arg0: i32) -> (i32, i32) {
    %c0_i32 = arith.constant 0 : i32
    %c0_i32_0 = arith.constant 0 : i32
    %c0_i32_1 = arith.constant 0 : i32
    return %c0_i32, %c0_i32_0 : i32, i32
  }
  func.func @transform_4(%arg0: i32) -> (i32, i32) {
    %c0_i32 = arith.constant 0 : i32
    %c0_i32_0 = arith.constant 0 : i32
    %c0_i32_1 = arith.constant 0 : i32
    return %c0_i32, %c0_i32_0 : i32, i32
  }
  func.func @transform_5(%arg0: i32) -> (i32, i32) {
    %c0_i32 = arith.constant 0 : i32
    %c0_i32_0 = arith.constant 0 : i32
    %c0_i32_1 = arith.constant 0 : i32
    return %c0_i32, %c0_i32_0 : i32, i32
  }
  func.func @transform_6(%arg0: i32) -> (i32, i32) {
    %c0_i32 = arith.constant 0 : i32
    %c0_i32_0 = arith.constant 0 : i32
    %c0_i32_1 = arith.constant 0 : i32
    return %c0_i32, %c0_i32_0 : i32, i32
  }
  func.func @transform_7(%arg0: i32) -> (i32, i32, i32) {
    %c0_i32 = arith.constant 0 : i32
    %c0_i32_0 = arith.constant 0 : i32
    %c0_i32_1 = arith.constant 0 : i32
    return %arg0, %c0_i32, %c0_i32_0 : i32, i32, i32
  }
}

</mosaic_0001>

<bundles_post_ra>
// kernel: tpu_custom_call.1
= control target key start
LH: loop header
LB: loop body
LE: loop exit
PB: predicated region body
PF: predicated region fallthrough
CT: control target
= control target key end

     0   :  { %s2120_s0 = inlined_call_operand.hbm [shape: f32[2,16,512], index: 0, kind: input, shape index: {}]   ;;  %s2121_s1 = inlined_call_operand.hbm [shape: f32[9,512], index: 1, kind: input, shape index: {}]   ;;  %s2122_s2 = inlined_call_operand.vmem [shape: f32[1,512], index: 2, kind: input, shape index: {}]   ;;  %s2123_s3 = inlined_call_operand.vmem [shape: f32[32,8], index: 3, kind: input, shape index: {}]   ;;  %s2124_s4 = inlined_call_operand.vmem [shape: f32[1,8], index: 4, kind: input, shape index: {}]   ;;  %s2125_s5 = inlined_call_operand.vmem [shape: f32[8,32], index: 5, kind: input, shape index: {}]   ;;  %s2126_s6 = inlined_call_operand.vmem [shape: f32[1,32], index: 6, kind: input, shape index: {}]   ;;  %s2127_s7 = inlined_call_operand.hbm [shape: f32[2,16,512], index: 7, kind: output, shape index: {}]  }
   0x1   :  { %2142 = sst [smem:[#allocation19_spill]] %s2121_s1 }
   0x2   :  { %12 = vsyncpa [#allocation3], 0 }
   0x3   :  { %14 = vsyncpa [#allocation3 + $0x1], 0 }
   0x4   :  { %15 = vsyncpa [#allocation6], 0 }
   0x5   :  { %16 = vsyncpa [#allocation4], 0 }
   0x6   :  { %18 = vsyncpa [#allocation4 + $0x1], 0  ;;  %s1365_s24 = smov 0   ;;  %s1367_s25 = smov 0  }
   0x7   :  { %s1369_s26 = smov 0   ;;  %s1371_s27 = smov 0  }
   0x8 LB: > { %s1386_s28 = sadd.s32 4294967295, %s1315_s27   ;;  %s1092_s29 = sadd.s32 4294967294, %s1315_s27   ;;  %s1315_s27 = sphi %s1371_s27, %s2221_s27   ;;  %s1311_s26 = sphi %s1369_s26, %s2220_s26   ;;  %s1307_s25 = sphi %s1367_s25, %s2219_s25   ;;  %s1303_s24 = sphi %s1365_s24, %s2218_s24  }
   0x9   : > { %p44_p0 = scmp.ne.s32.totalorder %s1307_s25, %s1303_s24  ;;  %p45_p1 = scmp.eq.s32.totalorder %s1386_s28, 0 }
   0xa   : > { %p194_p2 = scmp.eq.s32.totalorder %s1386_s28, 1  ;;  %p200_p3 = scmp.eq.s32.totalorder %s1092_s29, 1 }
   0xb   : > { %p1395_p4 = por %p45_p1, %p44_p0  ;;  %p1093_p5 = scmp.ge.s32.totalorder %s1315_s27, 1 }
   0xc   : > { %p1400_p6 = por %p200_p3, %p44_p0  ;;  %p207_p7 = scmp.lt.s32.totalorder %s1315_s27, 3 }
   0xd   : > { %s2145_s1 = sld [smem:[#allocation19_spill]]  ;;  %s1317_s13 = smov [#allocation5]  }
   0xe   : > { %p1408_p8 = pnand %p1093_p5, %p207_p7  ;;  %s220_s14 = sshll.u32 %s1317_s13, 4  ;;  %s221_s14 = int_to_ptr.vmem [resolvable:$true] %s220_s14 }
   0xf   : > { %s1418_s15 = sadd.s32 1, %s1315_s27   ;;  %s2128_s16 = smov 512  }
  0x10   : > { %p1121_p9 = pneg %p1408_p8  ;;  %s2129_s17 = smov 32  }
  0x11   : > { %s28_s18 = ssub.s32 %s1315_s27, %s1418_s15  ;;  %s31_s19 = sadd.s32 1, %s1311_s26 }
  0x12   : > { %p1122_p10 = pnand %p1121_p9, %p45_p1  ;;  %p29_p12 = scmp.eq.s32.totalorder %s28_s18, 0 }
  0x13   : > { %s218_s11 = sshll.u32 %s2145_s1, 4  ;;  %p38_p13 = scmp.ne.s32.totalorder %s1311_s26, %s1307_s25  ;;  %s219_s11 = int_to_ptr.hbm [resolvable:$true] %s218_s11 }
  0x14   : > { %1124 = dma.hbm_to_vmem [thread:$0]  (!%p1122_p10), %s219_s11, 1024, %s221_s14, [#allocation6], %s2128_s16, %s2128_s16, %s2129_s17  }
  0x15   : > { %p39_p0 = scmp.eq.s32.totalorder %s1315_s27, 0  ;;  %p1434_p3 = por %p194_p2, %p38_p13 }
  0x16   : > { %s1430_s20 = scalar_select %p29_p12, %s1311_s26, %s31_s19  }
  0x17   : > { %p1134_p5 = scmp.lt.s32.totalorder %s1315_s27, 2  ;;  %s249_s22 = sand.u32 1, %s1311_s26  }
  0x18   : > { %s1111_s23 = sshll.u32 %s1315_s27, 6  ;;  %p40_p7 = por %p39_p0, %p38_p13 }
  0x19   : > { %s1096_s29 = sshll.u32 %s249_s22, 6  ;;  %s258_s11 = scalar_lea.hbm %s2120_s0, %s1111_s23 }
  0x1a   : > { %s259_s13 = sshll.u32 %s258_s11, 4  ;;  %s253_s14 = scalar_lea.vmem [#allocation2], %s1096_s29  ;;  %s260_s13 = int_to_ptr.hbm [resolvable:$true] %s259_s13 }
  0x1b   : > { %s261_s18 = sshll.u32 %s253_s14, 4  ;;  %p1444_p9 = pnand %p1134_p5, %p40_p7  ;;  %s262_s18 = int_to_ptr.vmem [resolvable:$true] %s261_s18 }
  0x1c   : > { %s250_s16 = scalar_lea.sflag [#allocation3], %s249_s22  ;;  %s1215_s17 = sshra.s32 %s260_s13, 4  ;;  %s1216_s17 = int_to_ptr.hbm [resolvable:$true] %s1215_s17 }
  0x1d   : > { %s1217_s1 = scalar_lea.hbm %s1216_s17, 64  ;;  %p1219_p10 = pneg %p1444_p9 }
  0x1e   : > { %p1218_p2 = scmp.ne.s32.totalorder %s1216_s17, %s1217_s1  ;;  %s1222_s29 = scalar_lea.hbm %s2120_s0, 128 }
  0x1f   : > { %p1223_p0 = scmp.lt.s32.totalorder %s1216_s17, %s2120_s0  ;;  %p1224_p5 = scmp.lt.s32.totalorder %s1222_s29, %s1217_s1 }
  0x20   : > { %p1220_p12 = pnand %p1219_p10, %p1218_p2 }
  0x21   : > { %p1225_p7 = por %p1224_p5, %p1223_p0 }
  0x22   : > { %p1221_p13 = pneg %p1220_p12 }
  0x24   : > { %p1226_p11 = pnand %p1225_p7, %p1221_p13 }
  0x26   : > { %1229 = shalt.err (!%p1226_p11)
}
  0x27   : > { %s2149_s22 = smov 32   ;;  %s2150_s14 = smov 512  }
  0x28   : > { %1128 = dma.hbm_to_vmem [thread:$0]  (!%p1444_p9), %s260_s13, 1024, %s262_s18, %s250_s16, %s2150_s14, %s2150_s14, %s2149_s22  }
  0x29   : > { %273 = sbr.rel (%p1408_p8) target bundleno = 808 (0x328), region = 48 }
  0x2e   : > { %s1464_s23 = sand.u32 1, %s1307_s25  }
  0x2f   : > { %s1100_s1 = sshll.u32 %s1464_s23, 6  ;;  %s276_s17 = scalar_lea.sflag [#allocation3], %s1464_s23 }
  0x30   : > { %s279_s9 = scalar_lea.vmem [#allocation2], %s1100_s1 }
  0x31   : > { %1290 = dma.done.wait (%p1395_p4), %s276_s17, 1024  }
  0x32   : > { %1292 = vsyncadd (%p1395_p4), %s276_s17, 4294966272 }
  0x33   : > { %1294 = dma.done.wait (%p45_p1), [#allocation6], 1024  }
  0x34   : > { %1296 = vsyncadd (%p45_p1), [#allocation6], 4294966272  ;;  %v1320_v0 = vmov 0.0   ;;  %s1321_s12 = smov 32   ;;  %v1479_v1 = vld [vmem:[%s279_s9 + $0x18] sm:$0xff]  ;;  %v1481_v2 = vld [vmem:[%s279_s9] sm:$0xff]  ;;  %v333_v10 = vlaneseq }
  0x35   : > { %427 = vrot.lane.b32.xlu2 %v1320_v0, %s1321_s12  ;;  %358 = vrot.lane.b32.xlu1 %v1479_v1, %s1321_s12  ;;  %s1322_s30 = smov 96   ;;  %v1488_v3 = vld [vmem:[%s279_s9 + $0x38] sm:$0xff]  ;;  %v1490_v4 = vld [vmem:[%s279_s9 + $0x20] sm:$0xff]  ;;  %v1532_v13 = vld [vmem:[#allocation5 + $0x8] sm:$0xff]  ;;  %vm624_vm3 = vcmask 1040384   ;;  %vm757_vm4 = vcmask 1046528  }
  0x36   : > { %346 = vrot.lane.b32.xlu0 %v1481_v2, %s1321_s12  ;;  %v1492_v5 = vld [vmem:[%s279_s9 + $0x8] sm:$0xff]  ;;  %v1508_v7 = vld [vmem:[%s279_s9 + $0x10] sm:$0xff]  ;;  %v1530_v12 = vld [vmem:[#allocation5] sm:$0xff]  ;;  %v1538_v16 = vand.u32 127, %v333_v10  ;;  %v1544_v18 = vmul.f32 0.0, %v1532_v13  ;;  %v452_v10 = vperm.slane %v1532_v13, 4 }
  0x37   : > { %v1500_v6 = vld [vmem:[%s279_s9 + $0x28] sm:$0xff]  ;;  %v1516_v8 = vld [vmem:[%s279_s9 + $0x30] sm:$0xff]  ;;  %v1536_v15 = vld [vmem:[#allocation5 + $0x18] sm:$0xff]  ;;  %v1541_v17 = vmul.f32 0.0, %v1530_v12  ;;  %v451_v28 = vperm.slane %v1530_v12, 4  ;;  %v520_v33 = vperm.slane %v1530_v12, 1 }
  0x38   : > { %v1534_v14 = vld [vmem:[#allocation5 + $0x10] sm:$0xff]  ;;  %vm338_vm0 = vcmp.lt.s32.totalorder %v1538_v16, 32  ;;  %v1551_v20 = vmul.f32 0.0, %v1536_v15  ;;  %v573_v23 = vrot.slane %v1544_v18, 1  ;;  %v1558_v24 = vadd.s32 384, %v1538_v16  ;;  %s1323_s18 = smov 64  }
  0x39   : > { %v1547_v19 = vmul.f32 0.0, %v1534_v14  ;;  %v572_v22 = vrot.slane %v1541_v17, 1  ;;  %v439_v36 = vperm.slane %v1530_v12, 3  ;;  %v2136_v37 = vperm.slane %v1530_v12, 0  ;;  %v328_v47 = vld [vmem:[#allocation5 + $0x20] sm:$0x1] }
  0x3a   : > { %v575_v31 = vrot.slane %v1551_v20, 1  ;;  %v2134_v38 = vperm.slane %v1530_v12, 6  ;;  %vm345_vm1 = vcmp.ge.s32.totalorder %v1558_v24, 480  ;;  %v669_v41 = vperm.slane %v1530_v12, 7  ;;  %v331_v52 = vld [vmem:[#allocation5 + $0x38] sm:$0x1] }
  0x3b   : > { %v574_v27 = vrot.slane %v1547_v19, 1  ;;  %v1584_v42 = vmul.f32 %v451_v28, %v1481_v2  ;;  %v1593_v45 = vmul.f32 %v520_v33, %v1481_v2  ;;  %v2130_v46 = vperm.slane %v1536_v15, 4  ;;  %v329_v57 = vld [vmem:[#allocation5 + $0x28] sm:$0x1]  ;;  %v330_v62 = vld [vmem:[#allocation5 + $0x30] sm:$0x1] }
  0x3c   : > { %v2131_v54 = vperm.slane %v1536_v15, 1  ;;  %v2132_v55 = vperm.slane %v1536_v15, 7  ;;  %v1607_v58 = vmul.f32 %v669_v41, %v1481_v2  ;;  %v2135_v59 = vperm.slane %v1536_v15, 3  ;;  %s1112_s22 = sshll.u32 %s1386_s28, 6  ;;  %s315_s17 = scalar_lea.vmem [#allocation7], %s1100_s1 }
  0x3d   : > { %433 = vrot.lane.b32.xlu2 %v1320_v0, %s1322_s30  ;;  %360 = vrot.lane.b32.xlu1 %v1488_v3, %s1321_s12  ;;  %v1615_v63 = vmul.f32 %v2130_v46, %v1479_v1  ;;  %v2140_v18 = vperm.slane %v1532_v13, 6  ;;  %vm402_vm2 = vcmp.lt.s32.totalorder %v1538_v16, 96  ;;  %vm891_vm5 = vcmask 261120   ;;  %s1005_s14 = scalar_lea.hbm %s2127_s7, %s1112_s22  ;;  %s1006_s28 = sshll.u32 %s315_s17, 4  ;;  %s1007_s28 = int_to_ptr.vmem [resolvable:$true] %s1006_s28 }
  0x3e   : > { %348 = vrot.lane.b32.xlu0 %v1490_v4, %s1321_s12  ;;  %vm918_vm6 = vcmask 64512   ;;  %vm972_vm11 = vcmask 523264   ;;  %vm974_vm12 = vcmask 785408   ;;  %s1008_s9 = sshll.u32 %s1005_s14, 4  ;;  %s994_s1 = scalar_lea.sflag [#allocation4], %s1464_s23  ;;  %s1009_s9 = int_to_ptr.hbm [resolvable:$true] %s1008_s9 }
  0x3f   : > { %s1259_s16 = sshra.s32 %s1009_s9, 4  ;;  %s1265_s10 = scalar_lea.hbm %s2127_s7, 128  ;;  %s1260_s16 = int_to_ptr.hbm [resolvable:$true] %s1259_s16 }
  0x40   : > { %s1261_s13 = scalar_lea.hbm %s1260_s16, 64  ;;  %p1266_p11 = scmp.lt.s32.totalorder %s1260_s16, %s2127_s7 }
  0x41   : > { %p1262_p1 = scmp.ne.s32.totalorder %s1260_s16, %s1261_s13  ;;  %p1267_p9 = scmp.lt.s32.totalorder %s1265_s10, %s1261_s13 }
  0x43   : > { %p1263_p4 = pnand %p1262_p1, %p1434_p3  ;;  %p1268_p2 = por %p1267_p9, %p1266_p11 }
  0x45   : > { %390 = vrot.lane.b32.xlu2 %v1492_v5, %s1322_s30  ;;  %388 = vrot.lane.b32.xlu1 %v1490_v4, %s1322_s30  ;;  %p1264_p8 = pneg %p1263_p4 }
  0x46   : > { %386 = vrot.lane.b32.xlu0 %v1481_v2, %s1322_s30  ;;  %v1621_v2 = vmul.f32 %v451_v28, %v1490_v4 }
  0x47   : > { %p1269_p10 = pnand %p1268_p2, %p1264_p8 }
  0x4d   : > { %352 = vrot.lane.b32.xlu2 %v1500_v6, %s1321_s12  ;;  %350 = vrot.lane.b32.xlu1 %v1492_v5, %s1321_s12 }
  0x4e   : > { %392 = vrot.lane.b32.xlu0 %v1500_v6, %s1322_s30 }
  0x55   : > { %354 = vrot.lane.b32.xlu2 %v1508_v7, %s1321_s12  ;;  %396 = vrot.lane.b32.xlu1 %v1516_v8, %s1322_s30 }
  0x56   : > { %394 = vrot.lane.b32.xlu0 %v1508_v7, %s1322_s30 }
  0x5d   : > { %400 = vrot.lane.b32.xlu2 %v1488_v3, %s1322_s30  ;;  %398 = vrot.lane.b32.xlu1 %v1479_v1, %s1322_s30 }
  0x5e   : > { %356 = vrot.lane.b32.xlu0 %v1516_v8, %s1321_s12 }
  0x8f   : > { %v428_v9 = vpop.permute.xlu2 %427 }
  0x90   : > { %v429_v21 = vsel %vm338_vm0, 0.0, %v428_v9  ;;  %v561_v25 = vmul.f32 %v428_v9, %v1532_v13  ;;  %v562_v26 = vmul.f32 %v428_v9, %v1534_v14  ;;  %v563_v30 = vmul.f32 %v428_v9, %v1536_v15 }
  0x91   : > { %v560_v29 = vmul.f32 %v429_v21, %v1530_v12  ;;  %v713_v34 = vrot.slane %v429_v21, 2  ;;  %v714_v35 = vrot.slane %v428_v9, 2  ;;  %v670_v9 = vperm.slane %v1532_v13, 7 }
  0x92   : > { %v1576_v39 = vadd.f32 %v573_v23, %v561_v25  ;;  %v1580_v40 = vadd.f32 %v574_v27, %v562_v26  ;;  %v1588_v44 = vadd.f32 %v575_v31, %v563_v30  ;;  %v1635_v30 = vmul.f32 %v2132_v55, %v1479_v1 }
  0x93   : > { %v1586_v43 = vadd.f32 %v572_v22, %v560_v29  ;;  %v721_v48 = vmul.f32 %v713_v34, %v1530_v12  ;;  %v722_v49 = vmul.f32 %v714_v35, %v1532_v13  ;;  %v723_v50 = vmul.f32 %v714_v35, %v1534_v14 }
  0x94   : > { %v724_v51 = vmul.f32 %v714_v35, %v1536_v15  ;;  %v1630_v29 = vmul.f32 %v2131_v54, %v1479_v1  ;;  %v521_v54 = vperm.slane %v1532_v13, 1  ;;  %v1670_v19 = vmul.f32 %v670_v9, %v1500_v6 }
  0x96   : > { %v728_v0 = vadd.f32 %v724_v51, %v575_v31  ;;  %v1658_v31 = vmul.f32 %v520_v33, %v1490_v4  ;;  %v1664_v51 = vmul.f32 %v521_v54, %v1500_v6 }
  0x97   : > { %v1528_v11 = vpop.permute.xlu2 %433 }
  0x98   : > { %v588_v53 = vrot.slane %v1528_v11, 6  ;;  %v438_v56 = vsel %vm345_vm1, 0.0, %v1528_v11  ;;  %v729_v61 = vmul.f32 %v1528_v11, %v328_v47  ;;  %v730_v21 = vmul.f32 %v1528_v11, %v329_v57 }
  0x99   : > { %v591_v17 = vrot.slane %v438_v56, 6  ;;  %v732_v20 = vmul.f32 %v438_v56, %v331_v52  ;;  %v731_v28 = vmul.f32 %v1528_v11, %v330_v62  ;;  %v2137_v52 = vperm.slane %v1532_v13, 0 }
  0x9a   : > { %v596_v25 = vmul.f32 %v588_v53, %v1530_v12  ;;  %v597_v34 = vmul.f32 %v588_v53, %v1532_v13  ;;  %v725_v56 = vadd.f32 %v721_v48, %v572_v22  ;;  %v737_v57 = vrot.slane %v729_v61, 2 }
  0x9b   : > { %v598_v46 = vmul.f32 %v588_v53, %v1534_v14  ;;  %v599_v1 = vmul.f32 %v591_v17, %v1536_v15  ;;  %v740_v55 = vrot.slane %v732_v20, 2  ;;  %v726_v11 = vadd.f32 %v722_v49, %v573_v23 }
  0x9c   : > { %v738_v62 = vrot.slane %v730_v21, 2  ;;  %v604_v60 = vrot.slane %v596_v25, 2  ;;  %v1651_v22 = vmul.f32 %v452_v10, %v1500_v6  ;;  %v727_v48 = vadd.f32 %v723_v50, %v574_v27  ;;  %v1675_v27 = vld [vmem:[%s2122_s2] sm:$0xf] }
  0x9d   : > { %v739_v53 = vrot.slane %v731_v28, 2  ;;  %v605_v61 = vrot.slane %v597_v34, 2  ;;  %v1661_v23 = vadd.f32 %v737_v57, %v725_v56  ;;  %v606_v49 = vrot.slane %v598_v46, 2 }
  0x9e   : > { %v1667_v17 = vmul.f32 %v669_v41, %v1490_v4  ;;  %v607_v46 = vrot.slane %v599_v1, 2  ;;  %v1681_v50 = vadd.f32 %v740_v55, %v728_v0  ;;  %v1683_v20 = vadd.f32 %v738_v62, %v726_v11 }
  0x9f   : > { %v1567_v32 = vpop.permute.xlu2 %390  ;;  %v1688_v41 = vadd.f32 %v604_v60, %v1586_v43  ;;  %v1690_v21 = vadd.f32 %v739_v53, %v727_v48  ;;  %v1698_v0 = vadd.f32 %v605_v61, %v1576_v39  ;;  %v453_v60 = vperm.slane %v1534_v14, 4 }
  0xa0   : > { %2151 = vst [vmem:[#allocation11_spill] sm:$0xff] %v1681_v50  ;;  %v1707_v11 = vadd.f32 %v606_v49, %v1580_v40  ;;  %v1710_v62 = vadd.f32 %v607_v46, %v1588_v44  ;;  %v2133_v39 = vperm.slane %v1534_v14, 1  ;;  %v2138_v56 = vperm.slane %v1534_v14, 7 }
  0xa1   : > { %2152 = vst [vmem:[#allocation12_spill] sm:$0xff] %v1690_v21  ;;  %v1731_v53 = vmul.f32 %v453_v60, %v1508_v7  ;;  %v1736_v43 = vmul.f32 %v452_v10, %v1492_v5  ;;  %v1752_v55 = vmul.f32 %v670_v9, %v1492_v5  ;;  %v2154_v4 = vperm.slane %v1536_v15, 6 }
  0xa2   : > { %v1749_v61 = vmul.f32 %v2133_v39, %v1508_v7 }
  0xa7   : > { %v1625_v26 = vpop.permute.xlu2 %352  ;;  %v359_v35 = vpop.permute.xlu1 %358 }
  0xa8   : > { %v1639_v47 = vpop.permute.xlu0 %346 }
  0xa9   : > { %v368_v33 = vsel %vm338_vm0, %v359_v35, %v1639_v47 }
  0xaa   : > { %v378_v57 = vsel %vm338_vm0, 0.0, %v368_v33  ;;  %v1739_v33 = vmul.f32 %v521_v54, %v1492_v5  ;;  %v2153_v54 = vperm.slane %v1536_v15, 0 }
  0xab   : > { %v443_v40 = vmul.f32 %v439_v36, %v378_v57  ;;  %v512_v48 = vmul.f32 %v2136_v37, %v378_v57 }
  0xad   : > { %v463_v39 = vadd.f32 %v1584_v42, %v443_v40  ;;  %v532_v37 = vadd.f32 %v1593_v45, %v512_v48  ;;  %v1177_v48 = vld [vmem:[#allocation5 + $0x20] ss:$0 sm:$0xff] }
  0xaf   : > { %v1692_v25 = vpop.permute.xlu1 %360  ;;  %v1702_v1 = vpop.permute.xlu2 %354 }
  0xb0   : > { %v349_v28 = vpop.permute.xlu0 %348  ;;  %v362_v44 = vsel %vm338_vm0, %v1702_v1, %v359_v35  ;;  %v661_v35 = vmul.f32 %v2134_v38, %v378_v57 }
  0xb1   : > { %v369_v49 = vsel %vm338_vm0, %v1692_v25, %v349_v28  ;;  %v367_v46 = vsel %vm338_vm0, %v349_v28, %v1625_v26  ;;  %v446_v10 = vmul.f32 %v2135_v59, %v362_v44  ;;  %v515_v34 = vmul.f32 %v2153_v54, %v362_v44 }
  0xb2   : > { %v382_v57 = vsel %vm338_vm0, 0.0, %v369_v49  ;;  %v1763_v28 = vmul.f32 %v2138_v56, %v1508_v7  ;;  %v664_v5 = vmul.f32 %v2154_v4, %v362_v44  ;;  %v2155_v49 = vperm.slane %v1532_v13, 3 }
  0xb3   : > { %v517_v7 = vmul.f32 %v2137_v52, %v367_v46  ;;  %v681_v4 = vadd.f32 %v1607_v58, %v661_v35  ;;  %v447_v40 = vmul.f32 %v439_v36, %v382_v57  ;;  %v666_v45 = vmul.f32 %v2140_v18, %v367_v46 }
  0xb4   : > { %v448_v6 = vmul.f32 %v2155_v49, %v367_v46  ;;  %v2156_v44 = vperm.slane %v1530_v12, 2  ;;  %v1789_v54 = vadd.f32 %v1615_v63, %v446_v10  ;;  %v2157_v59 = vperm.slane %v1530_v12, 0 }
  0xb5   : > { %v2158_v56 = vperm.slane %v1530_v12, 6  ;;  %v2159_v58 = vperm.slane %v1530_v12, 5  ;;  %v1800_v46 = vadd.f32 %v1630_v29, %v515_v34  ;;  %v1803_v18 = vadd.f32 %v1635_v30, %v664_v5 }
  0xb6   : > { %v516_v52 = vmul.f32 %v2157_v59, %v382_v57  ;;  %v1807_v10 = vadd.f32 %v1651_v22, %v448_v6  ;;  %v1810_v59 = vadd.f32 %v1664_v51, %v517_v7  ;;  %v1816_v29 = vadd.f32 %v1670_v19, %v666_v45 }
  0xb7   : > { %v389_v9 = vpop.permute.xlu1 %388  ;;  %v665_v50 = vmul.f32 %v2158_v56, %v382_v57  ;;  %v1797_v36 = vpop.permute.xlu2 %400  ;;  %v1824_v34 = vmul.f32 %v453_v60, %v1516_v8 }
  0xb8   : > { %v1768_v38 = vpop.permute.xlu0 %386  ;;  %v536_v22 = vadd.f32 %v1658_v31, %v516_v52  ;;  %v2163_v52 = vperm.slane %v1536_v15, 1 }
  0xb9   : > { %v407_v42 = vsel %vm402_vm2, %v1768_v38, %v1567_v32  ;;  %v685_v6 = vadd.f32 %v1667_v17, %v665_v50 }
  0xba   : > { %v544_v49 = vmul.f32 %v2156_v44, %v407_v42  ;;  %v475_v35 = vmul.f32 %v2159_v58, %v407_v42  ;;  %v467_v58 = vadd.f32 %v1621_v2, %v447_v40  ;;  %v693_v30 = vmul.f32 %v1177_v48, %v407_v42 }
  0xbb   : > { %v2160_v2 = vperm.slane %v1536_v15, 4  ;;  %v2161_v42 = vperm.slane %v1534_v14, 1  ;;  %v1839_v31 = vmul.f32 %v2163_v52, %v1488_v3 }
  0xbc   : > { %v552_v44 = vadd.f32 %v544_v49, %v532_v37  ;;  %v410_v37 = vsel %vm402_vm2, %v1797_v36, %v389_v9  ;;  %v483_v51 = vadd.f32 %v475_v35, %v463_v39  ;;  %v701_v45 = vadd.f32 %v693_v30, %v681_v4  ;;  %v1851_v35 = vld [vmem:[#allocation5 + $0x38] ss:$0 sm:$0xff] }
  0xbd   : > { %v1829_v19 = vmul.f32 %v2160_v2, %v1488_v3  ;;  %v1834_v40 = vmul.f32 %v2161_v42, %v1516_v8  ;;  %2164 = vst [vmem:[#allocation14_spill] sm:$0xff] %v1839_v31  ;;  %v426_v17 = vsel %vm345_vm1, 0.0, %v410_v37  ;;  %v2165_v37 = vperm.slane %v1534_v14, 7 }
  0xbe   : > { %v625_v5 = vrot.slane %v552_v44, 7  ;;  %v2170_v30 = vperm.slane %v1536_v15, 7  ;;  %v1888_v21 = vmul.f32 %v1851_v35, %v426_v17 }
  0xbf   : > { %v351_v7 = vpop.permute.xlu1 %350  ;;  %2162 = vst [vmem:[#allocation13_spill] sm:$0xff] %v1834_v40  ;;  %v1858_v42 = vmul.f32 %v2165_v37, %v1516_v8  ;;  %v2172_v8 = vperm.slane %v1536_v15, 5  ;;  %v1179_v40 = vld [vmem:[#allocation5 + $0x28] ss:$0 sm:$0xff] }
  0xc0   : > { %v393_v49 = vpop.permute.xlu0 %392  ;;  %v364_v50 = vsel %vm338_vm0, %v351_v7, %v1702_v1  ;;  %v366_v60 = vsel %vm338_vm0, %v1639_v47, %v351_v7  ;;  %v2167_v1 = vperm.slane %v1675_v27, 0  ;;  %v2168_v47 = vperm.slane %v1530_v12, 5 }
  0xc1   : > { %v408_v39 = vsel %vm402_vm2, %v389_v9, %v393_v49  ;;  %2166 = vst [vmem:[#allocation15_spill] sm:$0xff] %v1858_v42  ;;  %v2169_v9 = vperm.slane %v1530_v12, 2  ;;  %v1869_v44 = vmul.f32 %v2170_v30, %v1488_v3  ;;  %v645_v2 = vsel %vm624_vm3, %v1688_v41, %v625_v5 }
  0xc2   : > { %v500_v52 = vadd.f32 %v2167_v1, %v483_v51  ;;  %v479_v7 = vmul.f32 %v2168_v47, %v408_v39  ;;  %v1875_v37 = vmul.f32 %v2172_v8, %v426_v17  ;;  %v2174_v51 = vperm.slane %v1532_v13, 3 }
  0xc3   : > { %v548_v4 = vmul.f32 %v2169_v9, %v408_v39  ;;  %2171 = vst [vmem:[#allocation16_spill] sm:$0xff] %v1869_v44  ;;  %v2175_v47 = vperm.slane %v1534_v14, 3  ;;  %v2176_v12 = vperm.slane %v1536_v15, 2  ;;  %v2178_v3 = vperm.slane %v1532_v13, 0 }
  0xc4   : > { %2173 = vst [vmem:[#allocation17_spill] sm:$0xff] %v1875_v37  ;;  %v444_v1 = vmul.f32 %v2174_v51, %v366_v60  ;;  %v487_v56 = vadd.f32 %v479_v7, %v467_v58  ;;  %v758_v41 = vrot.slane %v701_v45, 1  ;;  %v2179_v8 = vperm.slane %v1534_v14, 0 }
  0xc5   : > { %v445_v57 = vmul.f32 %v2175_v47, %v364_v50  ;;  %v1883_v9 = vmul.f32 %v2176_v12, %v426_v17  ;;  %v513_v30 = vmul.f32 %v2178_v3, %v366_v60  ;;  %v556_v63 = vadd.f32 %v548_v4, %v536_v22 }
  0xc6   : > { %v514_v44 = vmul.f32 %v2179_v8, %v364_v50  ;;  %v697_v51 = vmul.f32 %v1177_v48, %v408_v39  ;;  %v649_v42 = vadd.f32 %v645_v2, %v500_v52  ;;  %v2180_v47 = vperm.slane %v1532_v13, 6  ;;  %v1180_v2 = vld [vmem:[#allocation5 + $0x30] ss:$0 sm:$0xff] }
  0xc7   : > { %2177 = vst [vmem:[#allocation18_spill] sm:$0xff] %v1883_v9  ;;  %v2181_v12 = vperm.slane %v1675_v27, 0  ;;  %v629_v31 = vrot.slane %v556_v63, 7  ;;  %v464_v58 = vadd.f32 %v1736_v43, %v444_v1  ;;  %v465_v22 = vadd.f32 %v1731_v53, %v445_v57  ;;  %v397_v4 = vpop.permute.xlu1 %396 }
  0xc8   : > { %v662_v37 = vmul.f32 %v2180_v47, %v366_v60  ;;  %v2182_v17 = vperm.slane %v1534_v14, 6  ;;  %v705_v7 = vadd.f32 %v697_v51, %v685_v6  ;;  %v395_v3 = vpop.permute.xlu0 %394  ;;  %v533_v48 = vadd.f32 %v1739_v33, %v513_v30 }
  0xc9   : > { %v504_v9 = vadd.f32 %v2181_v12, %v487_v56  ;;  %v630_v39 = vsel %vm624_vm3, %v625_v5, %v629_v31  ;;  %v406_v60 = vsel %vm402_vm2, %v393_v49, %v397_v4  ;;  %v405_v63 = vsel %vm402_vm2, %v1567_v32, %v395_v3 }
  0xca   : > { %v663_v45 = vmul.f32 %v2182_v17, %v364_v50  ;;  %v534_v43 = vadd.f32 %v1749_v61, %v514_v44  ;;  %v759_v56 = vrot.slane %v705_v7, 1  ;;  %v2183_v57 = vperm.slane %v1532_v13, 5 }
  0xcb   : > { %v653_v53 = vadd.f32 %v630_v39, %v504_v9  ;;  %v682_v50 = vadd.f32 %v1752_v55, %v662_v37  ;;  %v404_v33 = vsel %vm402_vm2, %v397_v4, %v1797_v36  ;;  %v2184_v5 = vperm.slane %v1532_v13, 2 }
  0xcc   : > { %v480_v6 = vmul.f32 %v2183_v57, %v406_v60  ;;  %v698_v31 = vmul.f32 %v1179_v40, %v406_v60  ;;  %v760_v32 = vsel %vm757_vm4, %v758_v41, %v759_v56  ;;  %v2185_v61 = vrot.slane %v1661_v23, 7 }
  0xcd   : > { %v549_v49 = vmul.f32 %v2184_v5, %v406_v60  ;;  %v2186_v1 = vmov %v2183_v57  ;;  %v683_v37 = vadd.f32 %v1763_v28, %v663_v45  ;;  %v2187_v8 = vperm.slane %v1534_v14, 5 }
  0xce   : > { %v790_v44 = vsel %vm757_vm4, %v759_v56, %v2185_v61  ;;  %v488_v52 = vadd.f32 %v480_v6, %v1807_v10  ;;  %v476_v55 = vmul.f32 %v2186_v1, %v405_v63  ;;  %v706_v30 = vadd.f32 %v698_v31, %v1816_v29 }
  0xcf   : > { %v1924_v9 = vadd.f32 %v790_v44, %v653_v53  ;;  %v557_v36 = vadd.f32 %v549_v49, %v1810_v59  ;;  %v481_v41 = vmul.f32 %v2187_v8, %v404_v33  ;;  %v2188_v23 = vmov %v2184_v5  ;;  %v399_v53 = vpop.permute.xlu1 %398 }
  0xd0   : > { %v484_v51 = vadd.f32 %v476_v55, %v464_v58  ;;  %v545_v47 = vmul.f32 %v2188_v23, %v405_v63  ;;  %v694_v12 = vmul.f32 %v1179_v40, %v405_v63  ;;  %v1932_v10 = vadd.f32 %v760_v32, %v649_v42  ;;  %v357_v63 = vpop.permute.xlu0 %356 }
  0xd1   : > { %v2189_v17 = vperm.slane %v1675_v27, 1  ;;  %v2190_v28 = vperm.slane %v1534_v14, 2  ;;  %v1938_v4 = vmul.f32 %v1180_v2, %v404_v33  ;;  %v631_v59 = vrot.slane %v557_v36, 7 }
  0xd2   : > { %v762_v29 = vrot.slane %v706_v30, 1  ;;  %v553_v39 = vadd.f32 %v545_v47, %v533_v48  ;;  %v702_v60 = vadd.f32 %v694_v12, %v682_v50  ;;  %v403_v40 = vsel %vm402_vm2, %v395_v3, %v399_v53 }
  0xd3   : > { %v505_v7 = vadd.f32 %v2189_v17, %v488_v52  ;;  %v550_v45 = vmul.f32 %v2190_v28, %v404_v33  ;;  %v2191_v58 = vmov %v2189_v17  ;;  %v409_v42 = vsel %vm402_vm2, %v399_v53, %v1768_v38 }
  0xd4   : > { %v501_v13 = vadd.f32 %v2191_v58, %v484_v51  ;;  %v802_v56 = vadd.f32 %v1924_v9, %v1932_v10  ;;  %v626_v57 = vrot.slane %v553_v39, 7  ;;  %v761_v6 = vrot.slane %v702_v60, 1 }
  0xd5   : > { %v422_v48 = vsel %vm345_vm1, 0.0, %v409_v42  ;;  %v2192_v50 = vmov %v2187_v8  ;;  %v2193_v5 = vperm.slane %v1536_v15, 5  ;;  %v2194_v3 = vmov %v2190_v28 }
  0xd6   : > { %v477_v33 = vmul.f32 %v2192_v50, %v403_v40  ;;  %v546_v31 = vmul.f32 %v2194_v3, %v403_v40  ;;  %v2195_v38 = vperm.slane %v1536_v15, 2  ;;  %v695_v61 = vmul.f32 %v1180_v2, %v403_v40 }
  0xd7   : > { %v478_v49 = vmul.f32 %v2193_v5, %v422_v48  ;;  %v632_v44 = vsel %vm624_vm3, %v626_v57, %v631_v59  ;;  %v646_v52 = vsel %vm624_vm3, %v1698_v0, %v626_v57  ;;  %v363_v1 = vsel %vm338_vm0, %v357_v63, %v1692_v25  ;;  %v2203_v57 = vld [vmem:[#allocation13_spill] sm:$0xff] }
  0xd8   : > { %v547_v32 = vmul.f32 %v2195_v38, %v422_v48  ;;  %v485_v24 = vadd.f32 %v477_v33, %v465_v22  ;;  %v650_v55 = vadd.f32 %v646_v52, %v501_v13  ;;  %v654_v36 = vadd.f32 %v632_v44, %v505_v7  ;;  %v2209_v44 = vld [vmem:[#allocation15_spill] sm:$0xff] }
  0xd9   : > { %v486_v30 = vadd.f32 %v478_v49, %v1789_v54  ;;  %v554_v8 = vadd.f32 %v546_v31, %v534_v43  ;;  %v763_v51 = vsel %vm757_vm4, %v761_v6, %v762_v29  ;;  %v696_v2 = vmul.f32 %v1851_v35, %v422_v48  ;;  %v2204_v48 = vld [vmem:[#allocation14_spill] sm:$0xff]  ;;  %v2207_v31 = vld [vmem:[#allocation17_spill] sm:$0xff] }
  0xda   : > { %v555_v23 = vadd.f32 %v547_v32, %v1800_v46  ;;  %v703_v47 = vadd.f32 %v695_v61, %v683_v37  ;;  %v2196_v12 = vrot.slane %v1683_v20, 7  ;;  %v1972_v22 = vadd.f32 %v763_v51, %v650_v55  ;;  %v2208_v61 = vld [vmem:[#allocation18_spill] sm:$0xff] }
  0xdb   : > { %v2197_v25 = vperm.slane %v1675_v27, 2  ;;  %v627_v7 = vrot.slane %v554_v8, 7  ;;  %v704_v43 = vadd.f32 %v696_v2, %v1803_v18  ;;  %v365_v46 = vsel %vm338_vm0, %v1625_v26, %v357_v63 }
  0xdc   : > { %v791_v0 = vsel %vm757_vm4, %v762_v29, %v2196_v12  ;;  %v628_v54 = vrot.slane %v555_v23, 7  ;;  %v2198_v35 = vperm.slane %v1675_v27, 3  ;;  %v2199_v37 = vperm.slane %v1534_v14, 3 }
  0xdd   : > { %v502_v17 = vadd.f32 %v2197_v25, %v485_v24  ;;  %v1976_v28 = vadd.f32 %v791_v0, %v654_v36  ;;  %v2200_v29 = vperm.slane %v1536_v15, 3  ;;  %v2201_v60 = vperm.slane %v1534_v14, 0  ;;  %v2210_v24 = vld [vmem:[#allocation16_spill] sm:$0xff] }
  0xde   : > { %v503_v20 = vadd.f32 %v2198_v35, %v486_v30  ;;  %v449_v59 = vmul.f32 %v2199_v37, %v365_v46  ;;  %v647_v58 = vsel %vm624_vm3, %v1707_v11, %v627_v7  ;;  %v648_v18 = vsel %vm624_vm3, %v1710_v62, %v628_v54 }
  0xdf   : > { %v450_v39 = vmul.f32 %v2200_v29, %v363_v1  ;;  %v518_v53 = vmul.f32 %v2201_v60, %v365_v46  ;;  %v764_v16 = vrot.slane %v703_v47, 1  ;;  %v2202_v26 = vperm.slane %v1536_v15, 0 }
  0xe0   : > { %v767_v40 = vrot.slane %v704_v43, 1  ;;  %v469_v42 = vadd.f32 %v1824_v34, %v449_v59  ;;  %v2205_v33 = vperm.slane %v1534_v14, 6  ;;  %v2206_v11 = vperm.slane %v1536_v15, 6 }
  0xe1   : > { %v519_v13 = vmul.f32 %v2202_v26, %v363_v1  ;;  %v470_v63 = vadd.f32 %v1829_v19, %v450_v39  ;;  %v538_v6 = vadd.f32 %v2203_v57, %v518_v53  ;;  %v803_v62 = vrot.slane %v802_v56, 4  ;;  %v2213_v39 = vld [vmem:[#allocation12_spill] sm:$0xff] }
  0xe2   : > { %v667_v5 = vmul.f32 %v2205_v33, %v365_v46  ;;  %v668_v49 = vmul.f32 %v2206_v11, %v363_v1  ;;  %v489_v3 = vadd.f32 %v481_v41, %v469_v42  ;;  %v809_v34 = vadd.f32 %v1976_v28, %v1972_v22 }
  0xe3   : > { %v539_v50 = vadd.f32 %v2204_v48, %v519_v13  ;;  %v490_v38 = vadd.f32 %v2207_v31, %v470_v63  ;;  %v558_v32 = vadd.f32 %v550_v45, %v538_v6  ;;  %v804_v36 = vadd.f32 %v803_v62, %v802_v56 }
  0xe4   : > { %v687_v52 = vadd.f32 %v2209_v44, %v667_v5  ;;  %v688_v55 = vadd.f32 %v2210_v24, %v668_v49  ;;  %v2211_v14 = vmov %v2197_v25  ;;  %v2212_v15 = vmov %v2198_v35 }
  0xe5   : > { %v559_v19 = vadd.f32 %v2208_v61, %v539_v50  ;;  %v506_v30 = vadd.f32 %v2211_v14, %v489_v3  ;;  %v507_v1 = vadd.f32 %v2212_v15, %v490_v38  ;;  %v633_v41 = vrot.slane %v558_v32, 7  ;;  %v888_v61 = vld [vmem:[%s2123_s3 + $0x10] sm:$0xff] }
  0xe6   : > { %v810_v8 = vrot.slane %v809_v34, 4  ;;  %v707_v45 = vadd.f32 %v1938_v4, %v687_v52  ;;  %v708_v23 = vadd.f32 %v1888_v21, %v688_v55  ;;  %v805_v2 = vrot.slane %v804_v36, 2  ;;  %v886_v52 = vld [vmem:[%s2123_s3] sm:$0xff] }
  0xe7   : > { %v635_v51 = vrot.slane %v559_v19, 7  ;;  %v651_v47 = vadd.f32 %v647_v58, %v502_v17  ;;  %v652_v12 = vadd.f32 %v648_v18, %v503_v20  ;;  %v634_v0 = vsel %vm624_vm3, %v627_v7, %v633_v41  ;;  %v2215_v20 = vld [vmem:[#allocation11_spill] sm:$0xff]  ;;  %v887_v19 = vld [vmem:[%s2123_s3 + $0x8] sm:$0xff] }
  0xe8   : > { %v811_v25 = vadd.f32 %v810_v8, %v809_v34  ;;  %v655_v43 = vadd.f32 %v634_v0, %v506_v30  ;;  %v765_v46 = vrot.slane %v707_v45, 1  ;;  %v768_v35 = vrot.slane %v708_v23, 1  ;;  %v889_v34 = vld [vmem:[%s2123_s3 + $0x18] sm:$0xff] }
  0xe9   : > { %v636_v56 = vsel %vm624_vm3, %v628_v54, %v635_v51  ;;  %v806_v37 = vadd.f32 %v805_v2, %v804_v36  ;;  %v2214_v21 = vrot.slane %v2213_v39, 7  ;;  %v2216_v60 = vrot.slane %v2215_v20, 7  ;;  %907 = vmatpush.msra.mxu0 %v889_v34 }
  0xea   : > { %v656_v27 = vadd.f32 %v636_v56, %v507_v1  ;;  %v812_v59 = vrot.slane %v811_v25, 2  ;;  %v766_v29 = vsel %vm757_vm4, %v764_v16, %v765_v46  ;;  %v769_v4 = vsel %vm757_vm4, %v767_v40, %v768_v35 }
  0xeb   : > { %v792_v17 = vsel %vm757_vm4, %v765_v46, %v2214_v21  ;;  %v793_v7 = vsel %vm757_vm4, %v768_v35, %v2216_v60  ;;  %v2026_v53 = vadd.f32 %v766_v29, %v651_v47  ;;  %v2028_v54 = vadd.f32 %v769_v4, %v652_v12  ;;  %908 = vmatpush.msra.mxu0 %v888_v61  ;;  %v916_v21 = vld [vmem:[%s2125_s5] sm:$0xff] }
  0xec   : > { %v2030_v58 = vadd.f32 %v792_v17, %v655_v43  ;;  %v2032_v18 = vadd.f32 %v793_v7, %v656_v27  ;;  %v807_v26 = vrot.slane %v806_v37, 1  ;;  %v813_v16 = vadd.f32 %v812_v59, %v811_v25  ;;  %937 = vmatpush.msra.mxu1 %v916_v21  ;;  %v890_v17 = vld [vmem:[%s2124_s4] sm:$0x1] }
  0xed   : > { %909 = vmatpush.msra.mxu0 %v887_v19 }
  0xee   : > { %v816_v13 = vadd.f32 %v2030_v58, %v2026_v53  ;;  %v808_v40 = vadd.f32 %v807_v26, %v806_v37  ;;  %v823_v42 = vadd.f32 %v2032_v18, %v2028_v54  ;;  %v814_v57 = vrot.slane %v813_v16, 1  ;;  %v917_v26 = vld [vmem:[%s2126_s6] sm:$0x1] }
  0xef   : > { %910 = vmatpush.msra.mxu0 %v886_v52 }
  0xf0   : > { %v817_v63 = vrot.slane %v816_v13, 4  ;;  %839 = vrot.lane.b32.xlu2 %v808_v40, %s1321_s12  ;;  %835 = vrot.lane.b32.xlu1 %v808_v40, %s1323_s18  ;;  %v824_v48 = vrot.slane %v823_v42, 4  ;;  %v815_v33 = vadd.f32 %v814_v57, %v813_v16 }
  0xf1   : > { %831 = vrot.lane.b32.xlu0 %v808_v40, %s1322_s30 }
  0xf2   : > { %v818_v6 = vadd.f32 %v817_v63, %v816_v13  ;;  %v825_v11 = vadd.f32 %v824_v48, %v823_v42 }
  0xf4   : > { %v819_v50 = vrot.slane %v818_v6, 2  ;;  %v826_v62 = vrot.slane %v825_v11, 2 }
  0xf6   : > { %v820_v5 = vadd.f32 %v819_v50, %v818_v6  ;;  %v827_v31 = vadd.f32 %v826_v62, %v825_v11 }
  0xf8   : > { %853 = vrot.lane.b32.xlu2 %v815_v33, %s1321_s12  ;;  %849 = vrot.lane.b32.xlu1 %v815_v33, %s1323_s18  ;;  %v821_v49 = vrot.slane %v820_v5, 1  ;;  %v828_v38 = vrot.slane %v827_v31, 1 }
  0xf9   : > { %845 = vrot.lane.b32.xlu0 %v815_v33, %s1322_s30 }
  0xfa   : > { %v822_v3 = vadd.f32 %v821_v49, %v820_v5  ;;  %v829_v32 = vadd.f32 %v828_v38, %v827_v31 }
 0x100   : > { %867 = vrot.lane.b32.xlu2 %v822_v3, %s1321_s12  ;;  %863 = vrot.lane.b32.xlu1 %v822_v3, %s1323_s18 }
 0x101   : > { %859 = vrot.lane.b32.xlu0 %v822_v3, %s1322_s30 }
 0x108   : > { %881 = vrot.lane.b32.xlu2 %v829_v32, %s1321_s12  ;;  %877 = vrot.lane.b32.xlu1 %v829_v32, %s1323_s18 }
 0x109   : > { %873 = vrot.lane.b32.xlu0 %v829_v32, %s1322_s30 }
 0x14a   : > { %v840_v24 = vpop.permute.xlu2 %839 }
 0x152   : > { %v854_v51 = vpop.permute.xlu2 %853 }
 0x15a   : > { %v868_v25 = vpop.permute.xlu2 %867 }
 0x162   : > { %v836_v44 = vpop.permute.xlu1 %835  ;;  %v882_v29 = vpop.permute.xlu2 %881 }
 0x163   : > { %v832_v55 = vpop.permute.xlu0 %831 }
 0x164   : > { %v834_v36 = vadd.f32 %v832_v55, %v808_v40 }
 0x166   : > { %v838_v14 = vadd.f32 %v836_v44, %v834_v36 }
 0x168   : > { %v842_v30 = vadd.f32 %v840_v24, %v838_v14 }
 0x16a   : > { %v843_v15 = vadd.f32 %v842_v30, %v815_v33  ;;  %v850_v1 = vpop.permute.xlu1 %849 }
 0x16b   : > { %v846_v41 = vpop.permute.xlu0 %845 }
 0x16c   : > { %v848_v8 = vadd.f32 %v846_v41, %v843_v15 }
 0x16e   : > { %v852_v45 = vadd.f32 %v850_v1, %v848_v8 }
 0x170   : > { %v856_v23 = vadd.f32 %v854_v51, %v852_v45 }
 0x172   : > { %v857_v2 = vadd.f32 %v856_v23, %v822_v3  ;;  %v864_v47 = vpop.permute.xlu1 %863 }
 0x173   : > { %v860_v12 = vpop.permute.xlu0 %859 }
 0x174   : > { %v862_v0 = vadd.f32 %v860_v12, %v857_v2 }
 0x176   : > { %v866_v56 = vadd.f32 %v864_v47, %v862_v0 }
 0x178   : > { %v870_v43 = vadd.f32 %v868_v25, %v866_v56 }
 0x17a   : > { %v871_v46 = vadd.f32 %v870_v43, %v829_v32  ;;  %v878_v37 = vpop.permute.xlu1 %877 }
 0x17b   : > { %v874_v35 = vpop.permute.xlu0 %873 }
 0x17c   : > { %v876_v27 = vadd.f32 %v874_v35, %v871_v46 }
 0x17e   : > { %v880_v59 = vadd.f32 %v878_v37, %v876_v27 }
 0x180   : > { %v884_v4 = vadd.f32 %v882_v29, %v880_v59 }
 0x182   : > { %v885_v39 = vmul.f32 0.00390625, %v884_v4 }
 0x184   : > { %1103 = vmatmul.msk.f32.vlgmr.msra.gmra.mxu0 %vm891_vm5, %v885_v39 }
 0x201   : > { %v912_v20 = vpop.f32.mrf.mxu0 }
 0x202   : > { %v913_v60 = vadd.f32 %v912_v20, %v890_v17 }
 0x204   : > { %v915_v7 = vmax.f32 %v913_v60, 0.0 }
 0x206   : > { %1104 = vmatmul.msk.f32.vlgmr.msra.gmra.mxu1 %vm918_vm6, %v915_v7 }
 0x283   : > { %v939_v16 = vpop.f32.mrf.mxu1 }
 0x284   : > { %v940_v13 = vadd.f32 %v939_v16, %v917_v26 }
 0x286   : > { %v1105_v40 = vmul.f32 -1.442695, %v940_v13 }
 0x288   : > { %1181 = vpow2.f32 %v1105_v40 }
 0x28e   : > { %v1182_v42 = vpop.eup %1181 }
 0x28f   : > { %v945_v63 = vadd.f32 1.0, %v1182_v42 }
 0x291   : > { %1183 = vrcp.f32 %v945_v63  ;;  %v957_v50 = vand.u32 2147483648, %v945_v63  ;;  %v955_v5 = vand.u32 2147483647, %v945_v63  ;;  %vm951_vm8 = vweird.f32 %v945_v63 }
 0x293   : > { %v958_v49 = vor.u32 1.1754944e-38, %v957_v50  ;;  %vm956_vm10 = vcmp.eq.f32.partialorder %v955_v5, 8.507059e+37 }
 0x297   : > { %v1184_v57 = vpop.eup %1183 }
 0x298   : > { %v947_v6 = vmul.f32 %v1184_v57, %v945_v63  ;;  %vm952_vm7 = vweird.f32 %v1184_v57 }
 0x299   : > { %vm953_vm9 = vmor %vm951_vm8, %vm952_vm7 }
 0x29a   : > { %v948_v48 = vsub.f32 1.0, %v947_v6 }
 0x29c   : > { %v949_v33 = vmul.f32 %v1184_v57, %v948_v48 }
 0x29e   : > { %v950_v11 = vadd.f32 %v1184_v57, %v949_v33 }
 0x2a0   : > { %v954_v62 = vsel %vm953_vm9, %v1184_v57, %v950_v11 }
 0x2a1   : > { %v959_v3 = vsel %vm956_vm10, %v958_v49, %v954_v62 }
 0x2a2   : > { %968 = vrot.lane.b32.xlu2 %v959_v3, %s1322_s30  ;;  %965 = vrot.lane.b32.xlu1 %v959_v3, %s1323_s18 }
 0x2a3   : > { %962 = vrot.lane.b32.xlu0 %v959_v3, %s1321_s12 }
 0x2fc   : > { %v969_v34 = vpop.permute.xlu2 %968 }
 0x314   : > { %v966_v31 = vpop.permute.xlu1 %965 }
 0x315   : > { %v963_v38 = vpop.permute.xlu0 %962 }
 0x316   : > { %v971_v32 = vsel %vm891_vm5, %v959_v3, %v963_v38 }
 0x317   : > { %v973_v61 = vsel %vm972_vm11, %v971_v32, %v966_v31 }
 0x318   : > { %v975_v19 = vsel %vm974_vm12, %v973_v61, %v969_v34 }
 0x319   : > { %v976_v44 = vperm.slane %v975_v19, 0 }
 0x31b   : > { %v977_v52 = vmul.f32 %v976_v44, %v1932_v10  ;;  %v978_v24 = vmul.f32 %v976_v44, %v1972_v22  ;;  %v979_v55 = vmul.f32 %v976_v44, %v2026_v53  ;;  %v980_v36 = vmul.f32 %v976_v44, %v2028_v54 }
 0x31c   : > { %v981_v14 = vmul.f32 %v976_v44, %v1924_v9  ;;  %v982_v30 = vmul.f32 %v976_v44, %v1976_v28  ;;  %v983_v10 = vmul.f32 %v976_v44, %v2030_v58  ;;  %v984_v22 = vmul.f32 %v976_v44, %v2032_v18 }
 0x31d   : > { %985 = vst [vmem:[%s315_s17] sm:$0xff] %v977_v52 }
 0x31e   : > { %986 = vst [vmem:[%s315_s17 + $0x8] sm:$0xff] %v978_v24 }
 0x31f   : > { %987 = vst [vmem:[%s315_s17 + $0x10] sm:$0xff] %v979_v55 }
 0x320   : > { %988 = vst [vmem:[%s315_s17 + $0x18] sm:$0xff] %v980_v36 }
 0x321   : > { %989 = vst [vmem:[%s315_s17 + $0x20] sm:$0xff] %v981_v14 }
 0x322   : > { %990 = vst [vmem:[%s315_s17 + $0x28] sm:$0xff] %v982_v30 }
 0x323   : > { %991 = vst [vmem:[%s315_s17 + $0x30] sm:$0xff] %v983_v10 }
 0x324   : > { %992 = vst [vmem:[%s315_s17 + $0x38] sm:$0xff] %v984_v22 }
 0x325   : > { %1272 = shalt.err (!%p1269_p10)
}
 0x326   : > { %s1324_s23 = smov 512  }
 0x327   : > { %1119 = dma.vmem_to_hbm [thread:$0]  (%p1434_p3), %s1007_s28, 1024, %s1009_s9, %s994_s1, %s1324_s23, %s1324_s23, %s1321_s12  }
 0x328 PF: > { %s1023_s30 = sand.u32 1, %s1303_s24   ;;  %p2217_p12 = scmp.ge.s32.totalorder %s1315_s27, 2 }
 0x329   : > { %s1024_s18 = scalar_lea.sflag [#allocation4], %s1023_s30 }
 0x32a   : > { %p1130_p13 = pnand %p2217_p12, %p1400_p6 }
 0x32c   : > { %p1131_p0 = pneg %p1130_p13 }
 0x32e   : > { %1298 = dma.done.wait (%p1131_p0), %s1024_s18, 1024  }
 0x32f   : > { %1300 = vsyncadd (%p1131_p0), %s1024_s18, 4294966272  ;;  %p21_p5 = scmp.ge.s32.totalorder %s1418_s15, 4   ;;  %s2218_s24 = smov %s1307_s25 }
 0x330   : > { %s2219_s25 = smov %s1311_s26  ;;  %s2220_s26 = smov %s1430_s20 }
 0x331   : > { %s2221_s27 = smov %s1418_s15  ;;  %23 = sbr.rel (!%p21_p5) target bundleno = 8 (0x8), region = 97 }
 0x336   :  { %1030 = vsyncpa [#allocation3], 1 }
 0x337   :  { %1032 = vsyncpa [#allocation3 + $0x1], 1 }
 0x338   :  { %1033 = vsyncpa [#allocation6], 1 }
 0x339   :  { %1034 = vsyncpa [#allocation4], 1 }
 0x33a   :  { %1036 = vsyncpa [#allocation4 + $0x1], 1 }

</bundles_post_ra>
